<compile_context>
chip_gen: v5e
topology: v5e:2x2
jax: 0.10.0
libtpu: 0.0.40
codegen_flags: <defaults>
</compile_context>

<pallas_src>
import math

import jax
import jax.numpy as jnp
from jax.experimental import pallas as pl
from jax.experimental.pallas import tpu as pltpu


# Set True on v6e/v7x to run the matmuls with bf16 operands (f32 accumulation).
# Left False by default so results match the f32 reference to tight tolerance.
USE_BF16_MXU = False


def _mx(x):
    """Optionally cast a matmul operand to bf16 (accumulation stays f32)."""
    return x.astype(jnp.bfloat16) if USE_BF16_MXU else x


def _layernorm(v, g, b, eps=1e-5):
    mu = jnp.mean(v, axis=-1, keepdims=True)
    var = jnp.mean((v - mu) ** 2, axis=-1, keepdims=True)
    return (v - mu) * jax.lax.rsqrt(var + eps) * g + b


def make_kernel(batch, seq, embed, num_heads):
    N, L, E, H = batch, seq, embed, num_heads
    hd = E // H
    M = N * L
    scale = 1.0 / math.sqrt(hd)

    def kernel(x_ref, wqkv_ref, bqkv_ref, woT_ref, bo_ref,
               ln1g_ref, ln1b_ref, w1T_ref, b1_ref, w2T_ref, b2_ref,
               ln2g_ref, ln2b_ref,
               xatt_ref, attn_ref):
        x = x_ref[...]                                      # (M, E), rows ordered (n, l)

        # Packed Q/K/V projection: one (M, E) @ (E, 3E) matmul (weights pre-transposed).
        qkv = jnp.dot(_mx(x), _mx(wqkv_ref[...]),
                      preferred_element_type=jnp.float32) + bqkv_ref[...]

        woT = woT_ref[...]                                  # (E, E) = out_proj.weight.T

        acc = jnp.zeros((M, E), jnp.float32)                # attention output (pre-bias)
        attn_acc = jnp.zeros((N, L, L), jnp.float32)        # sum over heads of softmax probs

        for h in range(H):                                  # static loop over heads
            q_h = qkv[:, h * hd:(h + 1) * hd].reshape(N, L, hd)
            k_h = qkv[:, E + h * hd:E + (h + 1) * hd].reshape(N, L, hd)
            v_h = qkv[:, 2 * E + h * hd:2 * E + (h + 1) * hd].reshape(N, L, hd)

            s = jnp.einsum('nqd,nkd->nqk', _mx(q_h), _mx(k_h),
                           preferred_element_type=jnp.float32) * scale
            s = s - jnp.max(s, axis=-1, keepdims=True)
            p = jnp.exp(s)
            p = p * pl.reciprocal(jnp.sum(p, axis=-1, keepdims=True), approx=False)
            attn_acc = attn_acc + p

            ctx = jnp.einsum('nqk,nkd->nqd', _mx(p), _mx(v_h),
                             preferred_element_type=jnp.float32)        # (N, L, hd)
            # Per-head slice of the out-projection (block-matmul identity) replaces the
            # lane-dim concatenate of per-head contexts.
            acc = acc + jnp.dot(_mx(ctx.reshape(M, hd)),
                                _mx(woT[h * hd:(h + 1) * hd, :]),
                                preferred_element_type=jnp.float32)

        attn_out = acc + bo_ref[...]                        # (M, E)

        # dropout1 = identity (eval)  ->  LN1  ->  MLP  ->  residual  ->  LN2
        h1 = _layernorm(attn_out, ln1g_ref[...], ln1b_ref[...])
        mid = jnp.maximum(
            jnp.dot(_mx(h1), _mx(w1T_ref[...]), preferred_element_type=jnp.float32)
            + b1_ref[...], 0.0)
        h2 = jnp.dot(_mx(mid), _mx(w2T_ref[...]),
                     preferred_element_type=jnp.float32) + b2_ref[...]
        y = _layernorm(h1 + h2, ln2g_ref[...], ln2b_ref[...])

        xatt_ref[...] = y.reshape(N, L, E)
        attn_ref[...] = attn_acc * (1.0 / H)                # average over heads (PyTorch default)

    return kernel


def module_transformer_forward(x, params, num_heads):
    """x: (L, N, E) seq-first (PyTorch nn.MultiheadAttention convention)."""
    L, N, E = x.shape
    Hm = params['w1'].shape[0]
    M = N * L

    # Host-side layout plumbing: batch-first flattened activations, pre-transposed weights.
    x2d = jnp.transpose(x, (1, 0, 2)).reshape(M, E).astype(jnp.float32)
    wqkv = params['in_proj_w'].T.astype(jnp.float32)            # (E, 3E) packed Wq|Wk|Wv
    bqkv = params['in_proj_b'].reshape(1, 3 * E).astype(jnp.float32)
    woT = params['out_w'].T.astype(jnp.float32)                 # (E, E)
    bo = params['out_b'].reshape(1, E).astype(jnp.float32)
    ln1g = params['ln1_g'].reshape(1, E).astype(jnp.float32)
    ln1b = params['ln1_b'].reshape(1, E).astype(jnp.float32)
    w1T = params['w1'].T.astype(jnp.float32)                    # (E, Hm)
    b1 = params['b1'].reshape(1, Hm).astype(jnp.float32)
    w2T = params['w2'].T.astype(jnp.float32)                    # (Hm, E)
    b2 = params['b2'].reshape(1, E).astype(jnp.float32)
    ln2g = params['ln2_g'].reshape(1, E).astype(jnp.float32)
    ln2b = params['ln2_b'].reshape(1, E).astype(jnp.float32)

    def spec(shape):
        nd = len(shape)
        return pl.BlockSpec(shape, lambda i, _nd=nd: (0,) * _nd)

    inputs = [x2d, wqkv, bqkv, woT, bo, ln1g, ln1b, w1T, b1, w2T, b2, ln2g, ln2b]
    in_specs = [spec(a.shape) for a in inputs]
    out_specs = [spec((N, L, E)), spec((N, L, L))]
    out_shape = [jax.ShapeDtypeStruct((N, L, E), jnp.float32),
                 jax.ShapeDtypeStruct((N, L, L), jnp.float32)]

    xatt, attn = pl.pallas_call(
        make_kernel(N, L, E, num_heads),
        grid=(1,),
        in_specs=in_specs,
        out_specs=out_specs,
        out_shape=out_shape,
        compiler_params=pltpu.CompilerParams(dimension_semantics=("arbitrary",)),
    )(*inputs)

    x_attend = jnp.transpose(xatt, (1, 0, 2))                   # back to seq-first (L, N, E)
    return x_attend, attn                                       # attn: (N, L, L)


def reference_forward(x, params, num_heads):
    """Pure-JAX mirror of the PyTorch forward (eval mode), seq-first layout."""
    L, N, E = x.shape
    H = num_heads
    hd = E // H
    W = params['in_proj_w']
    b = params['in_proj_b']
    q = x @ W[:E].T + b[:E]
    k = x @ W[E:2 * E].T + b[E:2 * E]
    v = x @ W[2 * E:].T + b[2 * E:]
    qh = q.reshape(L, N, H, hd)
    kh = k.reshape(L, N, H, hd)
    vh = v.reshape(L, N, H, hd)
    s = jnp.einsum('lnhd,snhd->nhls', qh, kh) / math.sqrt(hd)
    p = jax.nn.softmax(s, axis=-1)                              # (N, H, L, S)
    ctx = jnp.einsum('nhls,snhd->lnhd', p, vh).reshape(L, N, E)
    attn_out = ctx @ params['out_w'].T + params['out_b']
    attn_avg = p.mean(axis=1)                                   # (N, L, S)
    h1 = _layernorm(attn_out, params['ln1_g'], params['ln1_b'])
    mid = jax.nn.relu(h1 @ params['w1'].T + params['b1'])
    h2 = mid @ params['w2'].T + params['b2']
    y = _layernorm(h1 + h2, params['ln2_g'], params['ln2_b'])
    return y, attn_avg


if __name__ == "__main__":
    # small shapes: seq=8, batch=4, input_dim=32, hidden_dim=64, num_heads=4
    L, N, E, Hm, NH = 8, 4, 32, 64, 4

    key = jax.random.PRNGKey(0)
    ks = jax.random.split(key, 13)

    def nrm(k, shape, s=0.1):
        return (jax.random.normal(k, shape) * s).astype(jnp.float32)

    params = dict(
        in_proj_w=nrm(ks[0], (3 * E, E)),       # packed [Wq; Wk; Wv] like nn.MultiheadAttention
        in_proj_b=nrm(ks[1], (3 * E,)),
        out_w=nrm(ks[2], (E, E)),
        out_b=nrm(ks[3], (E,)),
        ln1_g=1.0 + nrm(ks[4], (E,)),
        ln1_b=nrm(ks[5], (E,)),
        w1=nrm(ks[6], (Hm, E)),
        b1=nrm(ks[7], (Hm,)),
        w2=nrm(ks[8], (E, Hm)),
        b2=nrm(ks[9], (E,)),
        ln2_g=1.0 + nrm(ks[10], (E,)),
        ln2_b=nrm(ks[11], (E,)),
    )
    x = jax.random.normal(ks[12], (L, N, E), dtype=jnp.float32)

    out_x, out_attn = module_transformer_forward(x, params, NH)
    out_x = jax.block_until_ready(out_x)
    out_attn = jax.block_until_ready(out_attn)

    ref_x, ref_attn = reference_forward(x, params, NH)

    assert out_x.shape == (L, N, E), out_x.shape
    assert out_attn.shape == (N, L, L), out_attn.shape
    tol = 2e-2 if USE_BF16_MXU else 1e-4
    assert jnp.allclose(out_x, ref_x, atol=tol, rtol=tol), \
        float(jnp.max(jnp.abs(out_x - ref_x)))
    assert jnp.allclose(out_attn, ref_attn, atol=tol, rtol=tol), \
        float(jnp.max(jnp.abs(out_attn - ref_attn)))

    print("KERNEL_OK")
</pallas_src>

<mosaic_0001>
module attributes {stable_mosaic.version = 11 : i64} {
  func.func @kernel(%arg0: i32, %arg1: memref<32x32xf32, #tpu.memory_space<vmem>>, %arg2: memref<32x96xf32, #tpu.memory_space<vmem>>, %arg3: memref<1x96xf32, #tpu.memory_space<vmem>>, %arg4: memref<32x32xf32, #tpu.memory_space<vmem>>, %arg5: memref<1x32xf32, #tpu.memory_space<vmem>>, %arg6: memref<1x32xf32, #tpu.memory_space<vmem>>, %arg7: memref<1x32xf32, #tpu.memory_space<vmem>>, %arg8: memref<32x64xf32, #tpu.memory_space<vmem>>, %arg9: memref<1x64xf32, #tpu.memory_space<vmem>>, %arg10: memref<64x32xf32, #tpu.memory_space<vmem>>, %arg11: memref<1x32xf32, #tpu.memory_space<vmem>>, %arg12: memref<1x32xf32, #tpu.memory_space<vmem>>, %arg13: memref<1x32xf32, #tpu.memory_space<vmem>>, %arg14: memref<4x8x32xf32, #tpu.memory_space<vmem>>, %arg15: memref<4x8x8xf32, #tpu.memory_space<vmem>>) attributes {dimension_semantics = [#tpu.dimension_semantics<arbitrary>], iteration_bounds = array<i64: 1>, scalar_prefetch = 0 : i64, scratch_operands = 0 : i64, tpu.core_type = #tpu.core_type<tc>, window_params = [{pipeline_mode = #tpu.pipeline_mode<synchronous>, transform_indices = @transform_0, window_bounds = array<i64: 32, 32>}, {pipeline_mode = #tpu.pipeline_mode<synchronous>, transform_indices = @transform_1, window_bounds = array<i64: 32, 96>}, {pipeline_mode = #tpu.pipeline_mode<synchronous>, transform_indices = @transform_2, window_bounds = array<i64: 1, 96>}, {pipeline_mode = #tpu.pipeline_mode<synchronous>, transform_indices = @transform_3, window_bounds = array<i64: 32, 32>}, {pipeline_mode = #tpu.pipeline_mode<synchronous>, transform_indices = @transform_4, window_bounds = array<i64: 1, 32>}, {pipeline_mode = #tpu.pipeline_mode<synchronous>, transform_indices = @transform_5, window_bounds = array<i64: 1, 32>}, {pipeline_mode = #tpu.pipeline_mode<synchronous>, transform_indices = @transform_6, window_bounds = array<i64: 1, 32>}, {pipeline_mode = #tpu.pipeline_mode<synchronous>, transform_indices = @transform_7, window_bounds = array<i64: 32, 64>}, {pipeline_mode = #tpu.pipeline_mode<synchronous>, transform_indices = @transform_8, window_bounds = array<i64: 1, 64>}, {pipeline_mode = #tpu.pipeline_mode<synchronous>, transform_indices = @transform_9, window_bounds = array<i64: 64, 32>}, {pipeline_mode = #tpu.pipeline_mode<synchronous>, transform_indices = @transform_10, window_bounds = array<i64: 1, 32>}, {pipeline_mode = #tpu.pipeline_mode<synchronous>, transform_indices = @transform_11, window_bounds = array<i64: 1, 32>}, {pipeline_mode = #tpu.pipeline_mode<synchronous>, transform_indices = @transform_12, window_bounds = array<i64: 1, 32>}, {pipeline_mode = #tpu.pipeline_mode<synchronous>, transform_indices = @transform_13, window_bounds = array<i64: 4, 8, 32>}, {pipeline_mode = #tpu.pipeline_mode<synchronous>, transform_indices = @transform_14, window_bounds = array<i64: 4, 8, 8>}]} {
    %c0 = arith.constant 0 : index
    %c0_0 = arith.constant 0 : index
    %0 = vector.load %arg1[%c0, %c0_0] : memref<32x32xf32, #tpu.memory_space<vmem>>, vector<32x32xf32>
    %c0_1 = arith.constant 0 : index
    %c0_2 = arith.constant 0 : index
    %1 = vector.load %arg2[%c0_1, %c0_2] : memref<32x96xf32, #tpu.memory_space<vmem>>, vector<32x96xf32>
    %cst = arith.constant dense<0.000000e+00> : vector<32x96xf32>
    %2 = tpu.matmul %0, %1, %cst {dimension_numbers = #tpu.dot_dimension_numbers<[1], [0], [0], [1], [0, 0, 1, 1], [], []>} : vector<32x32xf32>, vector<32x96xf32>, vector<32x96xf32> -> vector<32x96xf32>
    %c0_3 = arith.constant 0 : index
    %c0_4 = arith.constant 0 : index
    %3 = vector.load %arg3[%c0_3, %c0_4] : memref<1x96xf32, #tpu.memory_space<vmem>>, vector<1x96xf32>
    %4 = vector.broadcast %3 : vector<1x96xf32> to vector<32x96xf32>
    %5 = arith.addf %2, %4 : vector<32x96xf32>
    %c0_5 = arith.constant 0 : index
    %c0_6 = arith.constant 0 : index
    %6 = vector.load %arg4[%c0_5, %c0_6] : memref<32x32xf32, #tpu.memory_space<vmem>>, vector<32x32xf32>
    %cst_7 = arith.constant 0.000000e+00 : f32
    %7 = vector.broadcast %cst_7 : f32 to vector<32x32xf32>
    %cst_8 = arith.constant 0.000000e+00 : f32
    %8 = vector.broadcast %cst_8 : f32 to vector<4x8x8xf32>
    %9 = vector.extract_strided_slice %5 {offsets = [0, 0], sizes = [32, 8], strides = [1, 1]} : vector<32x96xf32> to vector<32x8xf32>
    %10 = vector.shape_cast %9 : vector<32x8xf32> to vector<4x8x8xf32>
    %11 = vector.extract_strided_slice %5 {offsets = [0, 32], sizes = [32, 8], strides = [1, 1]} : vector<32x96xf32> to vector<32x8xf32>
    %12 = vector.shape_cast %11 : vector<32x8xf32> to vector<4x8x8xf32>
    %13 = vector.extract_strided_slice %5 {offsets = [0, 64], sizes = [32, 8], strides = [1, 1]} : vector<32x96xf32> to vector<32x8xf32>
    %14 = vector.shape_cast %13 : vector<32x8xf32> to vector<4x8x8xf32>
    "tpu.trace_start"() <{level = 10 : i32, message = "nqd,nkd->nqk"}> : () -> ()
    %cst_9 = arith.constant dense<0.000000e+00> : vector<4x8x8xf32>
    %15 = tpu.matmul %10, %12, %cst_9 {dimension_numbers = #tpu.dot_dimension_numbers<[2], [2], [1], [1], [0, 0, 0, 1, 1, 1], [0], [0]>} : vector<4x8x8xf32>, vector<4x8x8xf32>, vector<4x8x8xf32> -> vector<4x8x8xf32>
    "tpu.trace_stop"() : () -> ()
    %cst_10 = arith.constant 0.353553385 : f32
    %16 = vector.broadcast %cst_10 : f32 to vector<4x8x8xf32>
    %17 = arith.mulf %15, %16 : vector<4x8x8xf32>
    %cst_11 = arith.constant dense<0xFF800000> : vector<4x8xf32>
    %18 = vector.multi_reduction <maximumf>, %17, %cst_11 [2] : vector<4x8x8xf32> to vector<4x8xf32>
    %19 = vector.shape_cast %18 : vector<4x8xf32> to vector<4x8x1xf32>
    %20 = vector.broadcast %19 : vector<4x8x1xf32> to vector<4x8x8xf32>
    %21 = arith.subf %17, %20 : vector<4x8x8xf32>
    %22 = math.exp %21 : vector<4x8x8xf32>
    %cst_12 = arith.constant dense<0.000000e+00> : vector<4x8xf32>
    %23 = vector.multi_reduction <add>, %22, %cst_12 [2] : vector<4x8x8xf32> to vector<4x8xf32>
    %24 = vector.shape_cast %23 : vector<4x8xf32> to vector<4x8x1xf32>
    %25 = tpu.reciprocal %24 : vector<4x8x1xf32> -> vector<4x8x1xf32>
    %26 = vector.broadcast %25 : vector<4x8x1xf32> to vector<4x8x8xf32>
    %27 = arith.mulf %22, %26 : vector<4x8x8xf32>
    %28 = arith.addf %8, %27 : vector<4x8x8xf32>
    "tpu.trace_start"() <{level = 10 : i32, message = "nqk,nkd->nqd"}> : () -> ()
    %cst_13 = arith.constant dense<0.000000e+00> : vector<4x8x8xf32>
    %29 = tpu.matmul %27, %14, %cst_13 {dimension_numbers = #tpu.dot_dimension_numbers<[2], [1], [1], [2], [0, 0, 0, 1, 1, 2], [0], [0]>} : vector<4x8x8xf32>, vector<4x8x8xf32>, vector<4x8x8xf32> -> vector<4x8x8xf32>
    "tpu.trace_stop"() : () -> ()
    %30 = vector.shape_cast %29 : vector<4x8x8xf32> to vector<32x8xf32>
    %31 = vector.extract_strided_slice %6 {offsets = [0, 0], sizes = [8, 32], strides = [1, 1]} : vector<32x32xf32> to vector<8x32xf32>
    %cst_14 = arith.constant dense<0.000000e+00> : vector<32x32xf32>
    %32 = tpu.matmul %30, %31, %cst_14 {dimension_numbers = #tpu.dot_dimension_numbers<[1], [0], [0], [1], [0, 0, 1, 1], [], []>} : vector<32x8xf32>, vector<8x32xf32>, vector<32x32xf32> -> vector<32x32xf32>
    %33 = arith.addf %7, %32 : vector<32x32xf32>
    %34 = vector.extract_strided_slice %5 {offsets = [0, 8], sizes = [32, 8], strides = [1, 1]} : vector<32x96xf32> to vector<32x8xf32>
    %35 = vector.shape_cast %34 : vector<32x8xf32> to vector<4x8x8xf32>
    %36 = vector.extract_strided_slice %5 {offsets = [0, 40], sizes = [32, 8], strides = [1, 1]} : vector<32x96xf32> to vector<32x8xf32>
    %37 = vector.shape_cast %36 : vector<32x8xf32> to vector<4x8x8xf32>
    %38 = vector.extract_strided_slice %5 {offsets = [0, 72], sizes = [32, 8], strides = [1, 1]} : vector<32x96xf32> to vector<32x8xf32>
    %39 = vector.shape_cast %38 : vector<32x8xf32> to vector<4x8x8xf32>
    "tpu.trace_start"() <{level = 10 : i32, message = "nqd,nkd->nqk"}> : () -> ()
    %cst_15 = arith.constant dense<0.000000e+00> : vector<4x8x8xf32>
    %40 = tpu.matmul %35, %37, %cst_15 {dimension_numbers = #tpu.dot_dimension_numbers<[2], [2], [1], [1], [0, 0, 0, 1, 1, 1], [0], [0]>} : vector<4x8x8xf32>, vector<4x8x8xf32>, vector<4x8x8xf32> -> vector<4x8x8xf32>
    "tpu.trace_stop"() : () -> ()
    %cst_16 = arith.constant 0.353553385 : f32
    %41 = vector.broadcast %cst_16 : f32 to vector<4x8x8xf32>
    %42 = arith.mulf %40, %41 : vector<4x8x8xf32>
    %cst_17 = arith.constant dense<0xFF800000> : vector<4x8xf32>
    %43 = vector.multi_reduction <maximumf>, %42, %cst_17 [2] : vector<4x8x8xf32> to vector<4x8xf32>
    %44 = vector.shape_cast %43 : vector<4x8xf32> to vector<4x8x1xf32>
    %45 = vector.broadcast %44 : vector<4x8x1xf32> to vector<4x8x8xf32>
    %46 = arith.subf %42, %45 : vector<4x8x8xf32>
    %47 = math.exp %46 : vector<4x8x8xf32>
    %cst_18 = arith.constant dense<0.000000e+00> : vector<4x8xf32>
    %48 = vector.multi_reduction <add>, %47, %cst_18 [2] : vector<4x8x8xf32> to vector<4x8xf32>
    %49 = vector.shape_cast %48 : vector<4x8xf32> to vector<4x8x1xf32>
    %50 = tpu.reciprocal %49 : vector<4x8x1xf32> -> vector<4x8x1xf32>
    %51 = vector.broadcast %50 : vector<4x8x1xf32> to vector<4x8x8xf32>
    %52 = arith.mulf %47, %51 : vector<4x8x8xf32>
    %53 = arith.addf %28, %52 : vector<4x8x8xf32>
    "tpu.trace_start"() <{level = 10 : i32, message = "nqk,nkd->nqd"}> : () -> ()
    %cst_19 = arith.constant dense<0.000000e+00> : vector<4x8x8xf32>
    %54 = tpu.matmul %52, %39, %cst_19 {dimension_numbers = #tpu.dot_dimension_numbers<[2], [1], [1], [2], [0, 0, 0, 1, 1, 2], [0], [0]>} : vector<4x8x8xf32>, vector<4x8x8xf32>, vector<4x8x8xf32> -> vector<4x8x8xf32>
    "tpu.trace_stop"() : () -> ()
    %55 = vector.shape_cast %54 : vector<4x8x8xf32> to vector<32x8xf32>
    %56 = vector.extract_strided_slice %6 {offsets = [8, 0], sizes = [8, 32], strides = [1, 1]} : vector<32x32xf32> to vector<8x32xf32>
    %cst_20 = arith.constant dense<0.000000e+00> : vector<32x32xf32>
    %57 = tpu.matmul %55, %56, %cst_20 {dimension_numbers = #tpu.dot_dimension_numbers<[1], [0], [0], [1], [0, 0, 1, 1], [], []>} : vector<32x8xf32>, vector<8x32xf32>, vector<32x32xf32> -> vector<32x32xf32>
    %58 = arith.addf %33, %57 : vector<32x32xf32>
    %59 = vector.extract_strided_slice %5 {offsets = [0, 16], sizes = [32, 8], strides = [1, 1]} : vector<32x96xf32> to vector<32x8xf32>
    %60 = vector.shape_cast %59 : vector<32x8xf32> to vector<4x8x8xf32>
    %61 = vector.extract_strided_slice %5 {offsets = [0, 48], sizes = [32, 8], strides = [1, 1]} : vector<32x96xf32> to vector<32x8xf32>
    %62 = vector.shape_cast %61 : vector<32x8xf32> to vector<4x8x8xf32>
    %63 = vector.extract_strided_slice %5 {offsets = [0, 80], sizes = [32, 8], strides = [1, 1]} : vector<32x96xf32> to vector<32x8xf32>
    %64 = vector.shape_cast %63 : vector<32x8xf32> to vector<4x8x8xf32>
    "tpu.trace_start"() <{level = 10 : i32, message = "nqd,nkd->nqk"}> : () -> ()
    %cst_21 = arith.constant dense<0.000000e+00> : vector<4x8x8xf32>
    %65 = tpu.matmul %60, %62, %cst_21 {dimension_numbers = #tpu.dot_dimension_numbers<[2], [2], [1], [1], [0, 0, 0, 1, 1, 1], [0], [0]>} : vector<4x8x8xf32>, vector<4x8x8xf32>, vector<4x8x8xf32> -> vector<4x8x8xf32>
    "tpu.trace_stop"() : () -> ()
    %cst_22 = arith.constant 0.353553385 : f32
    %66 = vector.broadcast %cst_22 : f32 to vector<4x8x8xf32>
    %67 = arith.mulf %65, %66 : vector<4x8x8xf32>
    %cst_23 = arith.constant dense<0xFF800000> : vector<4x8xf32>
    %68 = vector.multi_reduction <maximumf>, %67, %cst_23 [2] : vector<4x8x8xf32> to vector<4x8xf32>
    %69 = vector.shape_cast %68 : vector<4x8xf32> to vector<4x8x1xf32>
    %70 = vector.broadcast %69 : vector<4x8x1xf32> to vector<4x8x8xf32>
    %71 = arith.subf %67, %70 : vector<4x8x8xf32>
    %72 = math.exp %71 : vector<4x8x8xf32>
    %cst_24 = arith.constant dense<0.000000e+00> : vector<4x8xf32>
    %73 = vector.multi_reduction <add>, %72, %cst_24 [2] : vector<4x8x8xf32> to vector<4x8xf32>
    %74 = vector.shape_cast %73 : vector<4x8xf32> to vector<4x8x1xf32>
    %75 = tpu.reciprocal %74 : vector<4x8x1xf32> -> vector<4x8x1xf32>
    %76 = vector.broadcast %75 : vector<4x8x1xf32> to vector<4x8x8xf32>
    %77 = arith.mulf %72, %76 : vector<4x8x8xf32>
    %78 = arith.addf %53, %77 : vector<4x8x8xf32>
    "tpu.trace_start"() <{level = 10 : i32, message = "nqk,nkd->nqd"}> : () -> ()
    %cst_25 = arith.constant dense<0.000000e+00> : vector<4x8x8xf32>
    %79 = tpu.matmul %77, %64, %cst_25 {dimension_numbers = #tpu.dot_dimension_numbers<[2], [1], [1], [2], [0, 0, 0, 1, 1, 2], [0], [0]>} : vector<4x8x8xf32>, vector<4x8x8xf32>, vector<4x8x8xf32> -> vector<4x8x8xf32>
    "tpu.trace_stop"() : () -> ()
    %80 = vector.shape_cast %79 : vector<4x8x8xf32> to vector<32x8xf32>
    %81 = vector.extract_strided_slice %6 {offsets = [16, 0], sizes = [8, 32], strides = [1, 1]} : vector<32x32xf32> to vector<8x32xf32>
    %cst_26 = arith.constant dense<0.000000e+00> : vector<32x32xf32>
    %82 = tpu.matmul %80, %81, %cst_26 {dimension_numbers = #tpu.dot_dimension_numbers<[1], [0], [0], [1], [0, 0, 1, 1], [], []>} : vector<32x8xf32>, vector<8x32xf32>, vector<32x32xf32> -> vector<32x32xf32>
    %83 = arith.addf %58, %82 : vector<32x32xf32>
    %84 = vector.extract_strided_slice %5 {offsets = [0, 24], sizes = [32, 8], strides = [1, 1]} : vector<32x96xf32> to vector<32x8xf32>
    %85 = vector.shape_cast %84 : vector<32x8xf32> to vector<4x8x8xf32>
    %86 = vector.extract_strided_slice %5 {offsets = [0, 56], sizes = [32, 8], strides = [1, 1]} : vector<32x96xf32> to vector<32x8xf32>
    %87 = vector.shape_cast %86 : vector<32x8xf32> to vector<4x8x8xf32>
    %88 = vector.extract_strided_slice %5 {offsets = [0, 88], sizes = [32, 8], strides = [1, 1]} : vector<32x96xf32> to vector<32x8xf32>
    %89 = vector.shape_cast %88 : vector<32x8xf32> to vector<4x8x8xf32>
    "tpu.trace_start"() <{level = 10 : i32, message = "nqd,nkd->nqk"}> : () -> ()
    %cst_27 = arith.constant dense<0.000000e+00> : vector<4x8x8xf32>
    %90 = tpu.matmul %85, %87, %cst_27 {dimension_numbers = #tpu.dot_dimension_numbers<[2], [2], [1], [1], [0, 0, 0, 1, 1, 1], [0], [0]>} : vector<4x8x8xf32>, vector<4x8x8xf32>, vector<4x8x8xf32> -> vector<4x8x8xf32>
    "tpu.trace_stop"() : () -> ()
    %cst_28 = arith.constant 0.353553385 : f32
    %91 = vector.broadcast %cst_28 : f32 to vector<4x8x8xf32>
    %92 = arith.mulf %90, %91 : vector<4x8x8xf32>
    %cst_29 = arith.constant dense<0xFF800000> : vector<4x8xf32>
    %93 = vector.multi_reduction <maximumf>, %92, %cst_29 [2] : vector<4x8x8xf32> to vector<4x8xf32>
    %94 = vector.shape_cast %93 : vector<4x8xf32> to vector<4x8x1xf32>
    %95 = vector.broadcast %94 : vector<4x8x1xf32> to vector<4x8x8xf32>
    %96 = arith.subf %92, %95 : vector<4x8x8xf32>
    %97 = math.exp %96 : vector<4x8x8xf32>
    %cst_30 = arith.constant dense<0.000000e+00> : vector<4x8xf32>
    %98 = vector.multi_reduction <add>, %97, %cst_30 [2] : vector<4x8x8xf32> to vector<4x8xf32>
    %99 = vector.shape_cast %98 : vector<4x8xf32> to vector<4x8x1xf32>
    %100 = tpu.reciprocal %99 : vector<4x8x1xf32> -> vector<4x8x1xf32>
    %101 = vector.broadcast %100 : vector<4x8x1xf32> to vector<4x8x8xf32>
    %102 = arith.mulf %97, %101 : vector<4x8x8xf32>
    %103 = arith.addf %78, %102 : vector<4x8x8xf32>
    "tpu.trace_start"() <{level = 10 : i32, message = "nqk,nkd->nqd"}> : () -> ()
    %cst_31 = arith.constant dense<0.000000e+00> : vector<4x8x8xf32>
    %104 = tpu.matmul %102, %89, %cst_31 {dimension_numbers = #tpu.dot_dimension_numbers<[2], [1], [1], [2], [0, 0, 0, 1, 1, 2], [0], [0]>} : vector<4x8x8xf32>, vector<4x8x8xf32>, vector<4x8x8xf32> -> vector<4x8x8xf32>
    "tpu.trace_stop"() : () -> ()
    %105 = vector.shape_cast %104 : vector<4x8x8xf32> to vector<32x8xf32>
    %106 = vector.extract_strided_slice %6 {offsets = [24, 0], sizes = [8, 32], strides = [1, 1]} : vector<32x32xf32> to vector<8x32xf32>
    %cst_32 = arith.constant dense<0.000000e+00> : vector<32x32xf32>
    %107 = tpu.matmul %105, %106, %cst_32 {dimension_numbers = #tpu.dot_dimension_numbers<[1], [0], [0], [1], [0, 0, 1, 1], [], []>} : vector<32x8xf32>, vector<8x32xf32>, vector<32x32xf32> -> vector<32x32xf32>
    %108 = arith.addf %83, %107 : vector<32x32xf32>
    %c0_33 = arith.constant 0 : index
    %c0_34 = arith.constant 0 : index
    %109 = vector.load %arg5[%c0_33, %c0_34] : memref<1x32xf32, #tpu.memory_space<vmem>>, vector<1x32xf32>
    %110 = vector.broadcast %109 : vector<1x32xf32> to vector<32x32xf32>
    %111 = arith.addf %108, %110 : vector<32x32xf32>
    %c0_35 = arith.constant 0 : index
    %c0_36 = arith.constant 0 : index
    %112 = vector.load %arg6[%c0_35, %c0_36] : memref<1x32xf32, #tpu.memory_space<vmem>>, vector<1x32xf32>
    %c0_37 = arith.constant 0 : index
    %c0_38 = arith.constant 0 : index
    %113 = vector.load %arg7[%c0_37, %c0_38] : memref<1x32xf32, #tpu.memory_space<vmem>>, vector<1x32xf32>
    %cst_39 = arith.constant dense<0.000000e+00> : vector<32xf32>
    %114 = vector.multi_reduction <add>, %111, %cst_39 [1] : vector<32x32xf32> to vector<32xf32>
    %115 = vector.shape_cast %114 : vector<32xf32> to vector<32x1xf32>
    %cst_40 = arith.constant 3.200000e+01 : f32
    %116 = vector.broadcast %cst_40 : f32 to vector<32x1xf32>
    %117 = arith.divf %115, %116 : vector<32x1xf32>
    %118 = vector.broadcast %117 : vector<32x1xf32> to vector<32x32xf32>
    %119 = arith.subf %111, %118 : vector<32x32xf32>
    %120 = arith.mulf %119, %119 : vector<32x32xf32>
    %cst_41 = arith.constant dense<0.000000e+00> : vector<32xf32>
    %121 = vector.multi_reduction <add>, %120, %cst_41 [1] : vector<32x32xf32> to vector<32xf32>
    %122 = vector.shape_cast %121 : vector<32xf32> to vector<32x1xf32>
    %cst_42 = arith.constant 3.200000e+01 : f32
    %123 = vector.broadcast %cst_42 : f32 to vector<32x1xf32>
    %124 = arith.divf %122, %123 : vector<32x1xf32>
    %125 = vector.broadcast %117 : vector<32x1xf32> to vector<32x32xf32>
    %126 = arith.subf %111, %125 : vector<32x32xf32>
    %cst_43 = arith.constant 9.99999974E-6 : f32
    %127 = vector.broadcast %cst_43 : f32 to vector<32x1xf32>
    %128 = arith.addf %124, %127 : vector<32x1xf32>
    %129 = math.rsqrt %128 : vector<32x1xf32>
    %130 = vector.broadcast %129 : vector<32x1xf32> to vector<32x32xf32>
    %131 = arith.mulf %126, %130 : vector<32x32xf32>
    %132 = vector.broadcast %112 : vector<1x32xf32> to vector<32x32xf32>
    %133 = arith.mulf %131, %132 : vector<32x32xf32>
    %134 = vector.broadcast %113 : vector<1x32xf32> to vector<32x32xf32>
    %135 = arith.addf %133, %134 : vector<32x32xf32>
    %c0_44 = arith.constant 0 : index
    %c0_45 = arith.constant 0 : index
    %136 = vector.load %arg8[%c0_44, %c0_45] : memref<32x64xf32, #tpu.memory_space<vmem>>, vector<32x64xf32>
    %cst_46 = arith.constant dense<0.000000e+00> : vector<32x64xf32>
    %137 = tpu.matmul %135, %136, %cst_46 {dimension_numbers = #tpu.dot_dimension_numbers<[1], [0], [0], [1], [0, 0, 1, 1], [], []>} : vector<32x32xf32>, vector<32x64xf32>, vector<32x64xf32> -> vector<32x64xf32>
    %c0_47 = arith.constant 0 : index
    %c0_48 = arith.constant 0 : index
    %138 = vector.load %arg9[%c0_47, %c0_48] : memref<1x64xf32, #tpu.memory_space<vmem>>, vector<1x64xf32>
    %139 = vector.broadcast %138 : vector<1x64xf32> to vector<32x64xf32>
    %140 = arith.addf %137, %139 : vector<32x64xf32>
    %cst_49 = arith.constant 0.000000e+00 : f32
    %141 = vector.broadcast %cst_49 : f32 to vector<32x64xf32>
    %142 = arith.maximumf %140, %141 : vector<32x64xf32>
    %c0_50 = arith.constant 0 : index
    %c0_51 = arith.constant 0 : index
    %143 = vector.load %arg10[%c0_50, %c0_51] : memref<64x32xf32, #tpu.memory_space<vmem>>, vector<64x32xf32>
    %cst_52 = arith.constant dense<0.000000e+00> : vector<32x32xf32>
    %144 = tpu.matmul %142, %143, %cst_52 {dimension_numbers = #tpu.dot_dimension_numbers<[1], [0], [0], [1], [0, 0, 1, 1], [], []>} : vector<32x64xf32>, vector<64x32xf32>, vector<32x32xf32> -> vector<32x32xf32>
    %c0_53 = arith.constant 0 : index
    %c0_54 = arith.constant 0 : index
    %145 = vector.load %arg11[%c0_53, %c0_54] : memref<1x32xf32, #tpu.memory_space<vmem>>, vector<1x32xf32>
    %146 = vector.broadcast %145 : vector<1x32xf32> to vector<32x32xf32>
    %147 = arith.addf %144, %146 : vector<32x32xf32>
    %148 = arith.addf %135, %147 : vector<32x32xf32>
    %c0_55 = arith.constant 0 : index
    %c0_56 = arith.constant 0 : index
    %149 = vector.load %arg12[%c0_55, %c0_56] : memref<1x32xf32, #tpu.memory_space<vmem>>, vector<1x32xf32>
    %c0_57 = arith.constant 0 : index
    %c0_58 = arith.constant 0 : index
    %150 = vector.load %arg13[%c0_57, %c0_58] : memref<1x32xf32, #tpu.memory_space<vmem>>, vector<1x32xf32>
    %cst_59 = arith.constant dense<0.000000e+00> : vector<32xf32>
    %151 = vector.multi_reduction <add>, %148, %cst_59 [1] : vector<32x32xf32> to vector<32xf32>
    %152 = vector.shape_cast %151 : vector<32xf32> to vector<32x1xf32>
    %cst_60 = arith.constant 3.200000e+01 : f32
    %153 = vector.broadcast %cst_60 : f32 to vector<32x1xf32>
    %154 = arith.divf %152, %153 : vector<32x1xf32>
    %155 = vector.broadcast %154 : vector<32x1xf32> to vector<32x32xf32>
    %156 = arith.subf %148, %155 : vector<32x32xf32>
    %157 = arith.mulf %156, %156 : vector<32x32xf32>
    %cst_61 = arith.constant dense<0.000000e+00> : vector<32xf32>
    %158 = vector.multi_reduction <add>, %157, %cst_61 [1] : vector<32x32xf32> to vector<32xf32>
    %159 = vector.shape_cast %158 : vector<32xf32> to vector<32x1xf32>
    %cst_62 = arith.constant 3.200000e+01 : f32
    %160 = vector.broadcast %cst_62 : f32 to vector<32x1xf32>
    %161 = arith.divf %159, %160 : vector<32x1xf32>
    %162 = vector.broadcast %154 : vector<32x1xf32> to vector<32x32xf32>
    %163 = arith.subf %148, %162 : vector<32x32xf32>
    %cst_63 = arith.constant 9.99999974E-6 : f32
    %164 = vector.broadcast %cst_63 : f32 to vector<32x1xf32>
    %165 = arith.addf %161, %164 : vector<32x1xf32>
    %166 = math.rsqrt %165 : vector<32x1xf32>
    %167 = vector.broadcast %166 : vector<32x1xf32> to vector<32x32xf32>
    %168 = arith.mulf %163, %167 : vector<32x32xf32>
    %169 = vector.broadcast %149 : vector<1x32xf32> to vector<32x32xf32>
    %170 = arith.mulf %168, %169 : vector<32x32xf32>
    %171 = vector.broadcast %150 : vector<1x32xf32> to vector<32x32xf32>
    %172 = arith.addf %170, %171 : vector<32x32xf32>
    %173 = vector.shape_cast %172 : vector<32x32xf32> to vector<4x8x32xf32>
    %c0_64 = arith.constant 0 : index
    %c0_65 = arith.constant 0 : index
    %c0_66 = arith.constant 0 : index
    %174 = vector.load %arg14[%c0_64, %c0_65, %c0_66] : memref<4x8x32xf32, #tpu.memory_space<vmem>>, vector<4x8x32xf32>
    tpu.vector_store %arg14[%c0_64, %c0_65, %c0_66], %173 {strides = array<i32>} : memref<4x8x32xf32, #tpu.memory_space<vmem>>, vector<4x8x32xf32>,
    %cst_67 = arith.constant 2.500000e-01 : f32
    %175 = vector.broadcast %cst_67 : f32 to vector<4x8x8xf32>
    %176 = arith.mulf %103, %175 : vector<4x8x8xf32>
    %c0_68 = arith.constant 0 : index
    %c0_69 = arith.constant 0 : index
    %c0_70 = arith.constant 0 : index
    %177 = vector.load %arg15[%c0_68, %c0_69, %c0_70] : memref<4x8x8xf32, #tpu.memory_space<vmem>>, vector<4x8x8xf32>
    tpu.vector_store %arg15[%c0_68, %c0_69, %c0_70], %176 {strides = array<i32>} : memref<4x8x8xf32, #tpu.memory_space<vmem>>, vector<4x8x8xf32>,
    return
  }
  func.func @transform_0(%arg0: i32) -> (i32, i32) {
    %c0_i32 = arith.constant 0 : i32
    %c0_i32_0 = arith.constant 0 : i32
    %c0_i32_1 = arith.constant 0 : i32
    return %c0_i32, %c0_i32_0 : i32, i32
  }
  func.func @transform_1(%arg0: i32) -> (i32, i32) {
    %c0_i32 = arith.constant 0 : i32
    %c0_i32_0 = arith.constant 0 : i32
    %c0_i32_1 = arith.constant 0 : i32
    return %c0_i32, %c0_i32_0 : i32, i32
  }
  func.func @transform_2(%arg0: i32) -> (i32, i32) {
    %c0_i32 = arith.constant 0 : i32
    %c0_i32_0 = arith.constant 0 : i32
    %c0_i32_1 = arith.constant 0 : i32
    return %c0_i32, %c0_i32_0 : i32, i32
  }
  func.func @transform_3(%arg0: i32) -> (i32, i32) {
    %c0_i32 = arith.constant 0 : i32
    %c0_i32_0 = arith.constant 0 : i32
    %c0_i32_1 = arith.constant 0 : i32
    return %c0_i32, %c0_i32_0 : i32, i32
  }
  func.func @transform_4(%arg0: i32) -> (i32, i32) {
    %c0_i32 = arith.constant 0 : i32
    %c0_i32_0 = arith.constant 0 : i32
    %c0_i32_1 = arith.constant 0 : i32
    return %c0_i32, %c0_i32_0 : i32, i32
  }
  func.func @transform_5(%arg0: i32) -> (i32, i32) {
    %c0_i32 = arith.constant 0 : i32
    %c0_i32_0 = arith.constant 0 : i32
    %c0_i32_1 = arith.constant 0 : i32
    return %c0_i32, %c0_i32_0 : i32, i32
  }
  func.func @transform_6(%arg0: i32) -> (i32, i32) {
    %c0_i32 = arith.constant 0 : i32
    %c0_i32_0 = arith.constant 0 : i32
    %c0_i32_1 = arith.constant 0 : i32
    return %c0_i32, %c0_i32_0 : i32, i32
  }
  func.func @transform_7(%arg0: i32) -> (i32, i32) {
    %c0_i32 = arith.constant 0 : i32
    %c0_i32_0 = arith.constant 0 : i32
    %c0_i32_1 = arith.constant 0 : i32
    return %c0_i32, %c0_i32_0 : i32, i32
  }
  func.func @transform_8(%arg0: i32) -> (i32, i32) {
    %c0_i32 = arith.constant 0 : i32
    %c0_i32_0 = arith.constant 0 : i32
    %c0_i32_1 = arith.constant 0 : i32
    return %c0_i32, %c0_i32_0 : i32, i32
  }
  func.func @transform_9(%arg0: i32) -> (i32, i32) {
    %c0_i32 = arith.constant 0 : i32
    %c0_i32_0 = arith.constant 0 : i32
    %c0_i32_1 = arith.constant 0 : i32
    return %c0_i32, %c0_i32_0 : i32, i32
  }
  func.func @transform_10(%arg0: i32) -> (i32, i32) {
    %c0_i32 = arith.constant 0 : i32
    %c0_i32_0 = arith.constant 0 : i32
    %c0_i32_1 = arith.constant 0 : i32
    return %c0_i32, %c0_i32_0 : i32, i32
  }
  func.func @transform_11(%arg0: i32) -> (i32, i32) {
    %c0_i32 = arith.constant 0 : i32
    %c0_i32_0 = arith.constant 0 : i32
    %c0_i32_1 = arith.constant 0 : i32
    return %c0_i32, %c0_i32_0 : i32, i32
  }
  func.func @transform_12(%arg0: i32) -> (i32, i32) {
    %c0_i32 = arith.constant 0 : i32
    %c0_i32_0 = arith.constant 0 : i32
    %c0_i32_1 = arith.constant 0 : i32
    return %c0_i32, %c0_i32_0 : i32, i32
  }
  func.func @transform_13(%arg0: i32) -> (i32, i32, i32) {
    %c0_i32 = arith.constant 0 : i32
    %c0_i32_0 = arith.constant 0 : i32
    %c0_i32_1 = arith.constant 0 : i32
    %c0_i32_2 = arith.constant 0 : i32
    return %c0_i32, %c0_i32_0, %c0_i32_1 : i32, i32, i32
  }
  func.func @transform_14(%arg0: i32) -> (i32, i32, i32) {
    %c0_i32 = arith.constant 0 : i32
    %c0_i32_0 = arith.constant 0 : i32
    %c0_i32_1 = arith.constant 0 : i32
    %c0_i32_2 = arith.constant 0 : i32
    return %c0_i32, %c0_i32_0, %c0_i32_1 : i32, i32, i32
  }
}

</mosaic_0001>

<bundles_post_ra>
// kernel: tpu_custom_call.1
= control target key start
LH: loop header
LB: loop body
LE: loop exit
PB: predicated region body
PF: predicated region fallthrough
CT: control target
= control target key end

     0   :  { %20 = vsyncpa [#allocation3], 0  ;;  %s2857_s0 = inlined_call_operand.vmem [shape: f32[32,32], index: 0, kind: input, shape index: {}]   ;;  %s2858_s1 = inlined_call_operand.vmem [shape: f32[32,96], index: 1, kind: input, shape index: {}]   ;;  %s2859_s2 = inlined_call_operand.vmem [shape: f32[1,96], index: 2, kind: input, shape index: {}]   ;;  %s2860_s3 = inlined_call_operand.vmem [shape: f32[32,32], index: 3, kind: input, shape index: {}]   ;;  %s2861_s4 = inlined_call_operand.vmem [shape: f32[1,32], index: 4, kind: input, shape index: {}]   ;;  %s2862_s5 = inlined_call_operand.vmem [shape: f32[1,32], index: 5, kind: input, shape index: {}]   ;;  %s2863_s6 = inlined_call_operand.vmem [shape: f32[1,32], index: 6, kind: input, shape index: {}]   ;;  %s2864_s7 = inlined_call_operand.hbm [shape: f32[32,64], index: 7, kind: input, shape index: {}]   ;;  %s2865_s8 = inlined_call_operand.vmem [shape: f32[1,64], index: 8, kind: input, shape index: {}]   ;;  %s2866_s9 = inlined_call_operand.vmem [shape: f32[64,32], index: 9, kind: input, shape index: {}]   ;;  %s2867_s10 = inlined_call_operand.vmem [shape: f32[1,32], index: 10, kind: input, shape index: {}]   ;;  %s2868_s11 = inlined_call_operand.vmem [shape: f32[1,32], index: 11, kind: input, shape index: {}]   ;;  %s2869_s12 = inlined_call_operand.vmem [shape: f32[1,32], index: 12, kind: input, shape index: {}]   ;;  %s2870_s13 = inlined_call_operand.hbm [shape: f32[4,8,32], index: 13, kind: output, shape index: {0}]   ;;  %s2871_s14 = inlined_call_operand.hbm [shape: f32[4,8,8], index: 14, kind: output, shape index: {1}]  }
   0x1   :  { %21 = vsyncpa [#allocation4], 0 }
   0x2   :  { %22 = vsyncpa [#allocation7], 0  ;;  %s41_s15 = sshll.u32 %s2864_s7, 4  ;;  %s2236_s16 = smov [#allocation2]   ;;  %s42_s15 = int_to_ptr.hbm [resolvable:$true] %s41_s15 }
   0x3   :  { %s43_s17 = sshll.u32 %s2236_s16, 4  ;;  %s2237_s18 = smov 128   ;;  %s44_s17 = int_to_ptr.vmem [resolvable:$true] %s43_s17 }
   0x4   :  { %s2238_s19 = smov 8  }
   0x5   :  { %49 = dma.hbm_to_vmem [thread:$0]  %s42_s15, 512, %s44_s17, [#allocation3], %s2237_s18, %s2237_s18, %s2238_s19  }
   0x6   :  { %2230 = dma.done.wait [#allocation3], 512  }
   0x7   :  { %2231 = vsyncadd [#allocation3], 4294966784  ;;  %v71_v0 = vld [vmem:[%s2858_s1 + $0x18] sm:$0xff]  ;;  %v70_v1 = vld [vmem:[%s2858_s1 + $0x10] sm:$0xff]  ;;  %vm76_vm0 = vcmask 261120   ;;  %s2239_s22 = smov 96  }
   0x8   :  { %101 = vmatpush.msra.mxu0 %v71_v0  ;;  %v69_v2 = vld [vmem:[%s2858_s1 + $0x8] sm:$0xff]  ;;  %v68_v3 = vld [vmem:[%s2858_s1] sm:$0xff]  ;;  %v66_v6 = vld [vmem:[%s2857_s0 + $0x10] sm:$0xff]  ;;  %vm125_vm1 = vcmask 64512   ;;  %s2242_s23 = smov 120   ;;  %s2243_s7 = smov 56  }
   0x9   :  { %v64_v4 = vld [vmem:[%s2857_s0] sm:$0xff]  ;;  %v65_v5 = vld [vmem:[%s2857_s0 + $0x8] sm:$0xff]  ;;  %v67_v7 = vld [vmem:[%s2857_s0 + $0x18] sm:$0xff]  ;;  %s2240_s0 = smov 88   ;;  %s2244_s24 = smov 80  }
   0xa   :  { %102 = vmatpush.msra.mxu0 %v70_v1  ;;  %v2068_v8 = vld [vmem:[%s2859_s2] ss:$0 sm:$0xff]  ;;  %s2241_s2 = smov 64   ;;  %s2245_s25 = smov 112  }
   0xb   :  { %s2246_s30 = smov 72   ;;  %s2247_s15 = smov 48  }
   0xc   :  { %103 = vmatpush.msra.mxu0 %v69_v2  ;;  %s2248_s16 = smov 104   ;;  %s2249_s1 = smov 40  }
   0xd   :  { %s1923_s28 = sshll.u32 %s2870_s13, 4  ;;  %s1924_s28 = int_to_ptr.hbm [resolvable:$true] %s1923_s28 }
   0xe   :  { %104 = vmatpush.msra.mxu0 %v68_v3 }
   0xf   :  { %1954 = vmatmul.msk.f32.vlgmr.msra.gmra.mxu0 %vm76_vm0, %v64_v4 }
  0x17   :  { %1955 = vmatmul.msk.f32.gmra.mxu0 %vm76_vm0, %v65_v5 }
  0x1f   :  { %1956 = vmatmul.msk.f32.gmra.mxu0 %vm76_vm0, %v66_v6 }
  0x27   :  { %1957 = vmatmul.msk.f32.gmra.mxu0 %vm76_vm0, %v67_v7 }
  0x8c   :  { %v106_v9 = vpop.f32.mrf.mxu0 }
  0x8d   :  { %v2365_v10 = vadd.f32 %v2068_v8, %v106_v9 }
  0x8f   :  { %123 = vrot.lane.b32.xlu0 %v2365_v10, %s2239_s22 }
  0x94   :  { %v109_v11 = vpop.f32.mrf.mxu0 }
  0x95   :  { %v2368_v12 = vadd.f32 %v2068_v8, %v109_v11 }
  0x97   :  { %151 = vrot.lane.b32.xlu0 %v2368_v12, %s2239_s22 }
  0x9c   :  { %v112_v13 = vpop.f32.mrf.mxu0 }
  0x9d   :  { %v2371_v14 = vadd.f32 %v2068_v8, %v112_v13 }
  0x9f   :  { %178 = vrot.lane.b32.xlu1 %v2371_v14, %s2239_s22  ;;  %v2048_v34 = vpack.i.bf16 %v2371_v14, %v2365_v10 }
  0xa4   :  { %v115_v15 = vpop.f32.mrf.mxu0 }
  0xa5   :  { %v2374_v16 = vadd.f32 %v2068_v8, %v115_v15 }
  0xa7   :  { %205 = vrot.lane.b32.xlu1 %v2374_v16, %s2239_s22  ;;  %v2053_v33 = vpack.i.bf16 %v2368_v12, %v2374_v16 }
 0x101   :  { %v124_v17 = vpop.permute.xlu0 %123 }
 0x102   :  { %1958 = vmatpush.xpose.msk.msra.mxu1 %vm125_vm1, %v124_v17 }
 0x105   :  { %1959 = vmatmul.msk.f32.vlgmr.msra.gmra.mxu1 %vm125_vm1, %v2365_v10 }
 0x109   :  { %v152_v18 = vpop.permute.xlu0 %151 }
 0x10a   :  { %1960 = vmatpush.xpose.msk.msrb.mxu1 %vm125_vm1, %v152_v18 }
 0x10d   :  { %1961 = vmatmul.msk.f32.vlgmr.msrb.gmra.mxu1 %vm125_vm1, %v2368_v12 }
 0x111   :  { %v179_v19 = vpop.permute.xlu1 %178 }
 0x112   :  { %1962 = vmatpush.xpose.msk.msra.mxu3 %vm125_vm1, %v179_v19 }
 0x115   :  { %1963 = vmatmul.msk.f32.vlgmr.msra.gmra.mxu3 %vm125_vm1, %v2371_v14 }
 0x119   :  { %v206_v20 = vpop.permute.xlu1 %205 }
 0x11a   :  { %1964 = vmatpush.xpose.msk.msra.mxu1 %vm125_vm1, %v206_v20 }
 0x11d   :  { %1965 = vmatmul.msk.f32.vlgmr.msra.gmra.mxu1 %vm125_vm1, %v2374_v16 }
 0x182   :  { %v147_v21 = vpop.f32.mrf.mxu1 }
 0x183   :  { %v231_v22 = vmul.f32 0.35355338, %v147_v21 }
 0x185   :  { %v235_v23 = vsel %vm125_vm1, %v231_v22, -inf }
 0x186   :  { %236 = vmax.xlane.f32.xlu2 %v235_v23 }
 0x18a   :  { %v174_v24 = vpop.f32.mrf.mxu1 }
 0x18b   :  { %v232_v25 = vmul.f32 0.35355338, %v174_v24 }
 0x18d   :  { %v238_v26 = vsel %vm125_vm1, %v232_v25, -inf }
 0x18e   :  { %239 = vmax.xlane.f32.xlu1 %v238_v26 }
 0x198   :  { %v201_v27 = vpop.f32.mrf.mxu3 }
 0x199   :  { %v233_v28 = vmul.f32 0.35355338, %v201_v27 }
 0x19a   :  { %v228_v29 = vpop.f32.mrf.mxu1 }
 0x19b   :  { %v234_v30 = vmul.f32 0.35355338, %v228_v29  ;;  %v241_v31 = vsel %vm125_vm1, %v233_v28, -inf }
 0x19c   :  { %242 = vmax.xlane.f32.xlu2 %v241_v31 }
 0x19d   :  { %v244_v32 = vsel %vm125_vm1, %v234_v30, -inf }
 0x19e   :  { %245 = vmax.xlane.f32.xlu0 %v244_v32 }
 0x1a7   :  { %469 = vrot.lane.b32.xlu1 %v2368_v12, %s2240_s0 }
 0x1af   :  { %441 = vrot.lane.b32.xlu1 %v2365_v10, %s2240_s0 }
 0x1b2   :  { %2054 = vrot.lane.b32.xlu0 %v2053_v33, %s2241_s2 }
 0x1b4   :  { %2049 = vrot.lane.b32.xlu2 %v2048_v34, %s2241_s2 }
 0x1b7   :  { %523 = vrot.lane.b32.xlu1 %v2374_v16, %s2242_s23 }
 0x1ba   :  { %467 = vrot.lane.b32.xlu0 %v2368_v12, %s2242_s23 }
 0x1bc   :  { %497 = vrot.lane.b32.xlu2 %v2371_v14, %s2240_s0 }
 0x1c2   :  { %439 = vrot.lane.b32.xlu0 %v2365_v10, %s2242_s23 }
 0x1c4   :  { %495 = vrot.lane.b32.xlu2 %v2371_v14, %s2242_s23 }
 0x1f9   :  { %v237_v35 = vpop.xlane.xlu2 %236 }
 0x1fa   :  { %v247_v36 = vsub.f32 %v231_v22, %v237_v35 }
 0x1fc   :  { %v251_v37 = vmul.f32 1.442695, %v247_v36 }
 0x1fe   :  { %2076 = vpow2.f32 %v251_v37 }
 0x201   :  { %v240_v38 = vpop.xlane.xlu1 %239 }
 0x202   :  { %v248_v39 = vsub.f32 %v232_v25, %v240_v38 }
 0x204   :  { %v2077_v40 = vpop.eup %2076  ;;  %v253_v41 = vmul.f32 1.442695, %v248_v39 }
 0x205   :  { %v259_v42 = vsel %vm125_vm1, %v2077_v40, 0.0 }
 0x206   :  { %2078 = vpow2.f32 %v253_v41  ;;  %260 = vadd.xlane.f32.xlu2 %v259_v42 }
 0x20c   :  { %v2408_v43 = vpop.eup %2078 }
 0x20d   :  { %v262_v44 = vsel %vm125_vm1, %v2408_v43, 0.0 }
 0x20e   :  { %263 = vadd.xlane.f32.xlu2 %v262_v44 }
 0x20f   :  { %v243_v45 = vpop.xlane.xlu2 %242 }
 0x210   :  { %v249_v46 = vsub.f32 %v233_v28, %v243_v45 }
 0x211   :  { %v246_v47 = vpop.xlane.xlu0 %245 }
 0x212   :  { %v255_v48 = vmul.f32 1.442695, %v249_v46  ;;  %v250_v49 = vsub.f32 %v234_v30, %v246_v47 }
 0x214   :  { %2080 = vpow2.f32 %v255_v48  ;;  %v257_v50 = vmul.f32 1.442695, %v250_v49 }
 0x216   :  { %2082 = vpow2.f32 %v257_v50 }
 0x217   :  { %v2050_v51 = vpop.permute.xlu2 %2049 }
 0x218   :  { %v2052_v52 = vunpack.i.h.bf16 %v2050_v51  ;;  %v2051_v53 = vunpack.i.l.bf16 %v2050_v51 }
 0x219   :  { %v470_v54 = vpop.permute.xlu1 %469 }
 0x21a   :  { %v2412_v55 = vpop.eup %2080  ;;  %356 = vmatpush.msra.mxu2 %v2051_v53  ;;  %408 = vmatpush.msrb.mxu1 %v2052_v52 }
 0x21b   :  { %v265_v56 = vsel %vm125_vm1, %v2412_v55, 0.0 }
 0x21c   :  { %1972 = vmatpush.xpose.msk.msra.mxu1 %vm125_vm1, %v470_v54  ;;  %266 = vadd.xlane.f32.xlu2 %v265_v56  ;;  %v2417_v57 = vpop.eup %2082 }
 0x21d   :  { %v268_v58 = vsel %vm125_vm1, %v2417_v57, 0.0 }
 0x21f   :  { %v498_v63 = vpop.permute.xlu2 %497 }
 0x221   :  { %v442_v62 = vpop.permute.xlu1 %441 }
 0x224   :  { %269 = vadd.xlane.f32.xlu2 %v268_v58  ;;  %v2055_v59 = vpop.permute.xlu0 %2054 }
 0x225   :  { %v2057_v60 = vunpack.i.h.bf16 %v2055_v59  ;;  %v2056_v61 = vunpack.i.l.bf16 %v2055_v59 }
 0x227   :  { %382 = vmatpush.msrb.mxu3 %v2057_v60  ;;  %434 = vmatpush.msrb.mxu2 %v2056_v61  ;;  %v2424_v0 = vpop.permute.xlu2 %495 }
 0x229   :  { %1970 = vmatpush.xpose.msk.msra.mxu3 %vm125_vm1, %v442_v62  ;;  %v524_v51 = vpop.permute.xlu1 %523 }
 0x22c   :  { %v468_v28 = vpop.permute.xlu0 %467 }
 0x234   :  { %v440_v38 = vpop.permute.xlu0 %439 }
 0x23c   :  { %525 = vrot.lane.b32.xlu2 %v2374_v16, %s2240_s0 }
 0x279   :  { %v261_v1 = vpop.xlane.xlu2 %260 }
 0x27a   :  { %2084 = vrcp.f32 %v261_v1  ;;  %v282_v6 = vand.u32 2147483648, %v261_v1  ;;  %v280_v8 = vand.u32 2147483647, %v261_v1  ;;  %vm276_vm3 = vweird.f32 %v261_v1 }
 0x27c   :  { %v283_v13 = vor.u32 1.1754944e-38, %v282_v6  ;;  %vm281_vm5 = vcmp.eq.f32.partialorder %v280_v8, 8.507059e+37 }
 0x280   :  { %v2085_v2 = vpop.eup %2084 }
 0x281   :  { %v272_v3 = vmul.f32 %v2085_v2, %v261_v1  ;;  %v264_v4 = vpop.xlane.xlu2 %263  ;;  %vm277_vm2 = vweird.f32 %v2085_v2 }
 0x282   :  { %2086 = vrcp.f32 %v264_v4  ;;  %vm278_vm4 = vmor %vm276_vm3, %vm277_vm2  ;;  %v296_v21 = vand.u32 2147483648, %v264_v4  ;;  %v294_v23 = vand.u32 2147483647, %v264_v4  ;;  %vm290_vm7 = vweird.f32 %v264_v4 }
 0x283   :  { %v273_v5 = vsub.f32 1.0, %v272_v3 }
 0x284   :  { %v297_v26 = vor.u32 1.1754944e-38, %v296_v21  ;;  %vm295_vm9 = vcmp.eq.f32.partialorder %v294_v23, 8.507059e+37 }
 0x285   :  { %v274_v7 = vmul.f32 %v2085_v2, %v273_v5 }
 0x287   :  { %v275_v9 = vadd.f32 %v2085_v2, %v274_v7 }
 0x288   :  { %v2087_v11 = vpop.eup %2086 }
 0x289   :  { %v286_v15 = vmul.f32 %v2087_v11, %v264_v4  ;;  %v279_v17 = vsel %vm278_vm4, %v2085_v2, %v275_v9  ;;  %vm291_vm6 = vweird.f32 %v2087_v11 }
 0x28a   :  { %v284_v18 = vsel %vm281_vm5, %v283_v13, %v279_v17  ;;  %vm292_vm8 = vmor %vm290_vm7, %vm291_vm6 }
 0x28b   :  { %v287_v19 = vsub.f32 1.0, %v286_v15  ;;  %v2426_v20 = vmul.f32 %v2077_v40, %v284_v18 }
 0x28d   :  { %v288_v22 = vmul.f32 %v2087_v11, %v287_v19  ;;  %1966 = vmatmul.msk.f32.vlgmr.msra.gmra.mxu2 %vm125_vm1, %v2426_v20 }
 0x28e   :  { %1974 = vmatpush.xpose.msk.msra.mxu2 %vm125_vm1, %v498_v63 }
 0x28f   :  { %v289_v24 = vadd.f32 %v2087_v11, %v288_v22  ;;  %v267_v25 = vpop.xlane.xlu2 %266 }
 0x290   :  { %2088 = vrcp.f32 %v267_v25  ;;  %v310_v35 = vand.u32 2147483648, %v267_v25  ;;  %v308_v37 = vand.u32 2147483647, %v267_v25  ;;  %vm304_vm11 = vweird.f32 %v267_v25 }
 0x291   :  { %v293_v27 = vsel %vm292_vm8, %v2087_v11, %v289_v24 }
 0x292   :  { %v298_v29 = vsel %vm295_vm9, %v297_v26, %v293_v27  ;;  %v311_v41 = vor.u32 1.1754944e-38, %v310_v35  ;;  %vm309_vm13 = vcmp.eq.f32.partialorder %v308_v37, 8.507059e+37 }
 0x293   :  { %v2432_v30 = vmul.f32 %v2408_v43, %v298_v29 }
 0x295   :  { %1967 = vmatmul.msk.f32.vlgmr.msrb.gmra.mxu3 %vm125_vm1, %v2432_v30 }
 0x296   :  { %v2089_v31 = vpop.eup %2088 }
 0x297   :  { %v300_v32 = vmul.f32 %v2089_v31, %v267_v25  ;;  %v270_v33 = vpop.xlane.xlu2 %269  ;;  %vm305_vm10 = vweird.f32 %v2089_v31 }
 0x298   :  { %2090 = vrcp.f32 %v270_v33  ;;  %vm306_vm12 = vmor %vm304_vm11, %vm305_vm10  ;;  %v324_v48 = vand.u32 2147483648, %v270_v33  ;;  %v322_v50 = vand.u32 2147483647, %v270_v33  ;;  %vm318_vm15 = vweird.f32 %v270_v33 }
 0x299   :  { %v301_v34 = vsub.f32 1.0, %v300_v32 }
 0x29a   :  { %v325_v53 = vor.u32 1.1754944e-38, %v324_v48  ;;  %vm323_vm3 = vcmp.eq.f32.partialorder %v322_v50, 8.507059e+37 }
 0x29b   :  { %v302_v36 = vmul.f32 %v2089_v31, %v301_v34 }
 0x29d   :  { %v303_v39 = vadd.f32 %v2089_v31, %v302_v36  ;;  %1971 = vmatmul.msk.f32.vlgmr.msra.gmra.mxu3 %vm125_vm1, %v440_v38 }
 0x29e   :  { %v2091_v40 = vpop.eup %2090 }
 0x29f   :  { %v307_v42 = vsel %vm306_vm12, %v2089_v31, %v303_v39  ;;  %v314_v43 = vmul.f32 %v2091_v40, %v270_v33  ;;  %v526_v44 = vpop.permute.xlu2 %525  ;;  %vm319_vm14 = vweird.f32 %v2091_v40 }
 0x2a0   :  { %v312_v45 = vsel %vm309_vm13, %v311_v41, %v307_v42  ;;  %1976 = vmatpush.xpose.msk.msrb.mxu3 %vm125_vm1, %v526_v44  ;;  %vm320_vm2 = vmor %vm318_vm15, %vm319_vm14 }
 0x2a1   :  { %v315_v46 = vsub.f32 1.0, %v314_v43  ;;  %v2439_v47 = vmul.f32 %v2412_v55, %v312_v45 }
 0x2a3   :  { %v316_v49 = vmul.f32 %v2091_v40, %v315_v46  ;;  %1968 = vmatmul.msk.f32.vlgmr.msrb.gmra.mxu1 %vm125_vm1, %v2439_v47 }
 0x2a5   :  { %v317_v52 = vadd.f32 %v2091_v40, %v316_v49  ;;  %1977 = vmatmul.msk.f32.vlgmr.msrb.gmra.mxu3 %vm125_vm1, %v524_v51 }
 0x2a7   :  { %v321_v54 = vsel %vm320_vm2, %v2091_v40, %v317_v52 }
 0x2a8   :  { %v326_v56 = vsel %vm323_vm3, %v325_v53, %v321_v54  ;;  %v2506_v53 = vld [vmem:[%s2860_s3 + $0x8] sm:$0xff] }
 0x2a9   :  { %v2445_v55 = vmul.f32 %v2417_v57, %v326_v56 }
 0x2ab   :  { %1969 = vmatmul.msk.f32.vlgmr.msrb.gmra.mxu2 %vm125_vm1, %v2445_v55  ;;  %1973 = vmatmul.msk.f32.vlgmr.msra.gmra.mxu1 %vm125_vm1, %v468_v28  ;;  %v118_v28 = vld [vmem:[%s2860_s3] sm:$0xff] }
 0x2b3   :  { %1975 = vmatmul.msk.f32.vlgmr.msra.gmra.mxu2 %vm125_vm1, %v2424_v0 }
 0x310   :  { %v2458_v61 = vpop.f32.mrf.mxu2 }
 0x318   :  { %v2452_v58 = vpop.f32.mrf.mxu3 }
 0x320   :  { %v2454_v59 = vpop.f32.mrf.mxu1  ;;  %v2456_v60 = vpop.f32.mrf.mxu3 }
 0x328   :  { %v492_v62 = vpop.f32.mrf.mxu1  ;;  %v548_v63 = vpop.f32.mrf.mxu3 }
 0x329   :  { %v552_v57 = vmul.f32 0.35355338, %v492_v62  ;;  %v554_v1 = vmul.f32 0.35355338, %v548_v63 }
 0x32b   :  { %v558_v2 = vsel %vm125_vm1, %v552_v57, -inf  ;;  %v564_v3 = vsel %vm125_vm1, %v554_v1, -inf }
 0x32c   :  { %559 = vmax.xlane.f32.xlu0 %v558_v2  ;;  %565 = vmax.xlane.f32.xlu1 %v564_v3 }
 0x32e   :  { %v2462_v4 = vpop.f32.mrf.mxu2 }
 0x336   :  { %v520_v0 = vpop.f32.mrf.mxu2 }
 0x337   :  { %v553_v5 = vmul.f32 0.35355338, %v520_v0 }
 0x339   :  { %v561_v6 = vsel %vm125_vm1, %v553_v5, -inf }
 0x33a   :  { %562 = vmax.xlane.f32.xlu2 %v561_v6 }
 0x345   :  { %681 = vrot.lane.b32.xlu1 %v2368_v12, %s2243_s7 }
 0x34d   :  { %843 = vrot.lane.b32.xlu1 %v2365_v10, %s2244_s24 }
 0x355   :  { %897 = vrot.lane.b32.xlu1 %v2371_v14, %s2245_s25 }
 0x35d   :  { %927 = vrot.lane.b32.xlu1 %v2374_v16, %s2244_s24 }
 0x39f   :  { %v560_v7 = vpop.xlane.xlu0 %559  ;;  %v566_v8 = vpop.xlane.xlu1 %565 }
 0x3a0   :  { %v568_v9 = vsub.f32 %v552_v57, %v560_v7  ;;  %v570_v13 = vsub.f32 %v554_v1, %v566_v8 }
 0x3a2   :  { %v573_v11 = vmul.f32 1.442695, %v568_v9  ;;  %v577_v15 = vmul.f32 1.442695, %v570_v13 }
 0x3a4   :  { %2092 = vpow2.f32 %v573_v11 }
 0x3a5   :  { %2094 = vpow2.f32 %v577_v15 }
 0x3aa   :  { %v2093_v17 = vpop.eup %2092 }
 0x3ab   :  { %v582_v18 = vsel %vm125_vm1, %v2093_v17, 0.0  ;;  %v2474_v22 = vpop.eup %2094 }
 0x3ac   :  { %583 = vadd.xlane.f32.xlu0 %v582_v18  ;;  %v588_v24 = vsel %vm125_vm1, %v2474_v22, 0.0 }
 0x3ad   :  { %v563_v19 = vpop.xlane.xlu2 %562 }
 0x3ae   :  { %v569_v21 = vsub.f32 %v553_v5, %v563_v19 }
 0x3b0   :  { %v575_v23 = vmul.f32 1.442695, %v569_v21 }
 0x3b2   :  { %2096 = vpow2.f32 %v575_v23 }
 0x3b4   :  { %589 = vadd.xlane.f32.xlu0 %v588_v24 }
 0x3b7   :  { %v682_v25 = vpop.permute.xlu1 %681 }
 0x3b8   :  { %v2478_v26 = vpop.eup %2096  ;;  %702 = vmatpush.msrb.mxu2 %v682_v25 }
 0x3b9   :  { %v585_v27 = vsel %vm125_vm1, %v2478_v26, 0.0 }
 0x3ba   :  { %586 = vadd.xlane.f32.xlu2 %v585_v27  ;;  %827 = vmatpush.msra.mxu2 %v118_v28 }
 0x3bf   :  { %v844_v48 = vpop.permute.xlu1 %843 }
 0x3c7   :  { %v898_v9 = vpop.permute.xlu1 %897 }
 0x3c8   :  { %733 = vrot.lane.b32.xlu0 %v2374_v16, %s2243_s7 }
 0x3cf   :  { %v928_v21 = vpop.permute.xlu1 %927 }
 0x3d0   :  { %899 = vrot.lane.b32.xlu0 %v2371_v14, %s2244_s24 }
 0x3d2   :  { %707 = vrot.lane.b32.xlu2 %v2371_v14, %s2243_s7 }
 0x3d8   :  { %869 = vrot.lane.b32.xlu0 %v2368_v12, %s2245_s25 }
 0x3da   :  { %841 = vrot.lane.b32.xlu2 %v2365_v10, %s2245_s25 }
 0x3e2   :  { %871 = vrot.lane.b32.xlu2 %v2368_v12, %s2244_s24 }
 0x3ea   :  { %925 = vrot.lane.b32.xlu2 %v2374_v16, %s2245_s25 }
 0x41f   :  { %v584_v29 = vpop.xlane.xlu0 %583 }
 0x420   :  { %2098 = vrcp.f32 %v584_v29  ;;  %v616_v35 = vand.u32 2147483648, %v584_v29  ;;  %v614_v37 = vand.u32 2147483647, %v584_v29  ;;  %vm610_vm5 = vweird.f32 %v584_v29 }
 0x422   :  { %v617_v41 = vor.u32 1.1754944e-38, %v616_v35  ;;  %vm615_vm7 = vcmp.eq.f32.partialorder %v614_v37, 8.507059e+37 }
 0x426   :  { %v2099_v31 = vpop.eup %2098 }
 0x427   :  { %v606_v32 = vmul.f32 %v2099_v31, %v584_v29  ;;  %v590_v33 = vpop.xlane.xlu0 %589  ;;  %vm611_vm4 = vweird.f32 %v2099_v31 }
 0x428   :  { %2100 = vrcp.f32 %v590_v33  ;;  %vm612_vm6 = vmor %vm610_vm5, %vm611_vm4  ;;  %v644_v49 = vand.u32 2147483648, %v590_v33  ;;  %v642_v51 = vand.u32 2147483647, %v590_v33  ;;  %vm638_vm9 = vweird.f32 %v590_v33 }
 0x429   :  { %v607_v34 = vsub.f32 1.0, %v606_v32 }
 0x42a   :  { %v645_v63 = vor.u32 1.1754944e-38, %v644_v49  ;;  %vm643_vm11 = vcmp.eq.f32.partialorder %v642_v51, 8.507059e+37 }
 0x42b   :  { %v608_v36 = vmul.f32 %v2099_v31, %v607_v34 }
 0x42d   :  { %v609_v38 = vadd.f32 %v2099_v31, %v608_v36  ;;  %v587_v39 = vpop.xlane.xlu2 %586 }
 0x42e   :  { %v2101_v40 = vpop.eup %2100  ;;  %2102 = vrcp.f32 %v587_v39  ;;  %v630_v2 = vand.u32 2147483648, %v587_v39  ;;  %v628_v5 = vand.u32 2147483647, %v587_v39  ;;  %vm624_vm13 = vweird.f32 %v587_v39 }
 0x42f   :  { %v613_v42 = vsel %vm612_vm6, %v2099_v31, %v609_v38  ;;  %v634_v43 = vmul.f32 %v2101_v40, %v590_v33  ;;  %vm639_vm8 = vweird.f32 %v2101_v40 }
 0x430   :  { %v618_v44 = vsel %vm615_vm7, %v617_v41, %v613_v42  ;;  %vm640_vm10 = vmor %vm638_vm9, %vm639_vm8  ;;  %v631_v11 = vor.u32 1.1754944e-38, %v630_v2  ;;  %vm629_vm15 = vcmp.eq.f32.partialorder %v628_v5, 8.507059e+37 }
 0x431   :  { %v635_v45 = vsub.f32 1.0, %v634_v43  ;;  %v2499_v46 = vmul.f32 %v2093_v17, %v618_v44 }
 0x433   :  { %v636_v50 = vmul.f32 %v2101_v40, %v635_v45  ;;  %1979 = vmatmul.msk.f32.vlgmr.msrb.gmra.mxu2 %vm125_vm1, %v2499_v46  ;;  %v2556_v45 = vpack.i.bf16 %v2371_v14, %v2368_v12 }
 0x434   :  { %v2103_v52 = vpop.eup %2102 }
 0x435   :  { %v637_v54 = vadd.f32 %v2101_v40, %v636_v50  ;;  %v620_v56 = vmul.f32 %v2103_v52, %v587_v39  ;;  %v708_v62 = vpop.permute.xlu2 %707  ;;  %vm625_vm12 = vweird.f32 %v2103_v52 }
 0x436   :  { %728 = vmatpush.msra.mxu3 %v708_v62  ;;  %vm626_vm14 = vmor %vm624_vm13, %vm625_vm12 }
 0x437   :  { %v621_v57 = vsub.f32 1.0, %v620_v56  ;;  %v641_v1 = vsel %vm640_vm10, %v2101_v40, %v637_v54 }
 0x438   :  { %2030 = vmatpush.msrb.mxu3 %v2506_v53  ;;  %v646_v3 = vsel %vm643_vm11, %v645_v63, %v641_v1 }
 0x439   :  { %v622_v0 = vmul.f32 %v2103_v52, %v621_v57  ;;  %v2510_v6 = vmul.f32 %v2474_v22, %v646_v3 }
 0x43a   :  { %v734_v7 = vpop.permute.xlu0 %733 }
 0x43b   :  { %v623_v8 = vadd.f32 %v2103_v52, %v622_v0  ;;  %754 = vmatpush.msrb.mxu0 %v734_v7  ;;  %1986 = vmatmul.msk.f32.vlgmr.msra.gmra.mxu2 %vm125_vm1, %v2458_v61 }
 0x43c   :  { %1981 = vmatmul.msk.f32.vlgmr.msrb.gmra.mxu0 %vm125_vm1, %v2510_v6 }
 0x43d   :  { %v627_v13 = vsel %vm626_vm14, %v2103_v52, %v623_v8  ;;  %v842_v15 = vpop.permute.xlu2 %841 }
 0x43e   :  { %v632_v17 = vsel %vm629_vm15, %v631_v11, %v627_v13 }
 0x43f   :  { %v2517_v18 = vmul.f32 %v2478_v26, %v632_v17 }
 0x441   :  { %1980 = vmatmul.msk.f32.vlgmr.msra.gmra.mxu3 %vm125_vm1, %v2517_v18 }
 0x442   :  { %1990 = vmatpush.xpose.msk.msra.mxu3 %vm125_vm1, %v844_v48  ;;  %v900_v19 = vpop.permute.xlu0 %899 }
 0x443   :  { %1987 = vmatmul.msk.f32.gmra.mxu2 %vm125_vm1, %v2452_v58 }
 0x445   :  { %v872_v61 = vpop.permute.xlu2 %871 }
 0x446   :  { %1992 = vmatpush.xpose.msk.msra.mxu0 %vm125_vm1, %v872_v61  ;;  %v652_v61 = vadd.f32 %v2499_v46, %v2432_v30 }
 0x44a   :  { %1996 = vmatpush.xpose.msk.msrb.mxu0 %vm125_vm1, %v928_v21  ;;  %v870_v22 = vpop.permute.xlu0 %869 }
 0x44b   :  { %1988 = vmatmul.msk.f32.gmra.mxu2 %vm125_vm1, %v2454_v59  ;;  %1993 = vmatmul.msk.f32.vlgmr.msra.gmra.mxu0 %vm125_vm1, %v870_v22 }
 0x44d   :  { %v926_v23 = vpop.permute.xlu2 %925 }
 0x453   :  { %1989 = vmatmul.msk.f32.gmra.mxu2 %vm125_vm1, %v2462_v4  ;;  %1997 = vmatmul.msk.f32.vlgmr.msrb.gmra.mxu0 %vm125_vm1, %v926_v23 }
 0x4b6   :  { %v704_v24 = vpop.f32.mrf.mxu2 }
 0x4b7   :  { %1983 = vmatmul.msk.f32.vlgmr.msrb.gmra.mxu3 %vm125_vm1, %v704_v24 }
 0x4b8   :  { %1994 = vmatpush.xpose.msk.msrb.mxu3 %vm125_vm1, %v900_v19 }
 0x4b9   :  { %v756_v58 = vpop.f32.mrf.mxu0 }
 0x4c4   :  { %v730_v25 = vpop.f32.mrf.mxu3 }
 0x4c5   :  { %1984 = vmatmul.msk.f32.gmra.mxu3 %vm125_vm1, %v730_v25 }
 0x4c8   :  { %v894_v26 = vpop.f32.mrf.mxu0 }
 0x4c9   :  { %v954_v27 = vmul.f32 0.35355338, %v894_v26 }
 0x4cb   :  { %v960_v59 = vsel %vm125_vm1, %v954_v27, -inf }
 0x4cc   :  { %961 = vmax.xlane.f32.xlu1 %v960_v59 }
 0x4cd   :  { %1985 = vmatmul.msk.f32.gmra.mxu3 %vm125_vm1, %v756_v58 }
 0x4d0   :  { %v950_v36 = vpop.f32.mrf.mxu0 }
 0x4d1   :  { %v956_v38 = vmul.f32 0.35355338, %v950_v36 }
 0x4d3   :  { %v966_v42 = vsel %vm125_vm1, %v956_v38, -inf }
 0x4d5   :  { %1991 = vmatmul.msk.f32.vlgmr.msra.gmra.mxu3 %vm125_vm1, %v842_v15 }
 0x4dd   :  { %1995 = vmatmul.msk.f32.vlgmr.msrb.gmra.mxu3 %vm125_vm1, %v898_v9 }
 0x53a   :  { %v2539_v4 = vpop.f32.mrf.mxu3 }
 0x53f   :  { %v962_v31 = vpop.xlane.xlu1 %961 }
 0x540   :  { %v970_v34 = vsub.f32 %v954_v27, %v962_v31 }
 0x542   :  { %v975_v37 = vmul.f32 1.442695, %v970_v34 }
 0x544   :  { %2104 = vpow2.f32 %v975_v37 }
 0x548   :  { %v2541_v28 = vpop.f32.mrf.mxu3 }
 0x54a   :  { %v2105_v43 = vpop.eup %2104 }
 0x54b   :  { %v984_v44 = vsel %vm125_vm1, %v2105_v43, 0.0 }
 0x550   :  { %v2543_v29 = vpop.f32.mrf.mxu3 }
 0x558   :  { %v866_v32 = vpop.f32.mrf.mxu3 }
 0x559   :  { %v2545_v33 = vmul.f32 0.35355338, %v866_v32 }
 0x55b   :  { %v957_v35 = vsel %vm125_vm1, %v2545_v33, -inf }
 0x55c   :  { %958 = vmax.xlane.f32.xlu0 %v957_v35 }
 0x560   :  { %v922_v39 = vpop.f32.mrf.mxu3 }
 0x561   :  { %v955_v40 = vmul.f32 0.35355338, %v922_v39 }
 0x563   :  { %v963_v41 = vsel %vm125_vm1, %v955_v40, -inf }
 0x564   :  { %964 = vmax.xlane.f32.xlu2 %v963_v41  ;;  %967 = vmax.xlane.f32.xlu0 %v966_v42 }
 0x56c   :  { %985 = vadd.xlane.f32.xlu2 %v984_v44 }
 0x578   :  { %1208 = vrot.lane.b32.xlu0 %v2365_v10, %s2246_s30 }
 0x580   :  { %2059 = vrot.lane.b32.xlu0 %v2556_v45, %s2247_s15 }
 0x584   :  { %1057 = vrot.lane.b32.xlu2 %v2365_v10, %s2247_s15 }
 0x588   :  { %1234 = vrot.lane.b32.xlu0 %v2368_v12, %s2248_s16 }
 0x58c   :  { %1236 = vrot.lane.b32.xlu2 %v2368_v12, %s2246_s30 }
 0x594   :  { %1264 = vrot.lane.b32.xlu2 %v2371_v14, %s2246_s30 }
 0x59c   :  { %1290 = vrot.lane.b32.xlu2 %v2374_v16, %s2248_s16 }
 0x5cf   :  { %v959_v48 = vpop.xlane.xlu0 %958 }
 0x5d0   :  { %v969_v25 = vsub.f32 %v2545_v33, %v959_v48 }
 0x5d2   :  { %v973_v26 = vmul.f32 1.442695, %v969_v25  ;;  %v2623_v25 = vpop.f32.mrf.mxu2 }
 0x5d7   :  { %v968_v49 = vpop.xlane.xlu0 %967  ;;  %v965_v50 = vpop.xlane.xlu2 %964 }
 0x5d8   :  { %v972_v51 = vsub.f32 %v956_v38, %v968_v49  ;;  %v971_v52 = vsub.f32 %v955_v40, %v965_v50 }
 0x5da   :  { %v979_v54 = vmul.f32 1.442695, %v972_v51  ;;  %v977_v56 = vmul.f32 1.442695, %v971_v52 }
 0x5dc   :  { %2106 = vpow2.f32 %v979_v54 }
 0x5dd   :  { %2108 = vpow2.f32 %v977_v56 }
 0x5df   :  { %v986_v62 = vpop.xlane.xlu2 %985 }
 0x5e0   :  { %2110 = vrcp.f32 %v986_v62  ;;  %v1018_v7 = vand.u32 2147483648, %v986_v62  ;;  %v1016_v11 = vand.u32 2147483647, %v986_v62  ;;  %vm1012_vm3 = vweird.f32 %v986_v62 }
 0x5e1   :  { %2112 = vpow2.f32 %v973_v26 }
 0x5e2   :  { %v2570_v63 = vpop.eup %2106  ;;  %v1019_v15 = vor.u32 1.1754944e-38, %v1018_v7  ;;  %vm1017_vm5 = vcmp.eq.f32.partialorder %v1016_v11, 8.507059e+37 }
 0x5e3   :  { %v2572_v12 = vpop.eup %2108  ;;  %v990_v57 = vsel %vm125_vm1, %v2570_v63, 0.0 }
 0x5e4   :  { %991 = vadd.xlane.f32.xlu1 %v990_v57  ;;  %v987_v1 = vsel %vm125_vm1, %v2572_v12, 0.0 }
 0x5e5   :  { %988 = vadd.xlane.f32.xlu0 %v987_v1 }
 0x5e6   :  { %v2111_v2 = vpop.eup %2110 }
 0x5e7   :  { %v1008_v3 = vmul.f32 %v2111_v2, %v986_v62  ;;  %v1058_v0 = vpop.permute.xlu2 %1057  ;;  %vm1013_vm2 = vweird.f32 %v2111_v2  ;;  %v2113_v30 = vpop.eup %2112 }
 0x5e8   :  { %1078 = vmatpush.msra.mxu3 %v1058_v0  ;;  %vm1014_vm4 = vmor %vm1012_vm3, %vm1013_vm2  ;;  %v981_v46 = vsel %vm125_vm1, %v2113_v30, 0.0 }
 0x5e9   :  { %v1009_v5 = vsub.f32 1.0, %v1008_v3 }
 0x5ea   :  { %v1209_v8 = vpop.permute.xlu0 %1208 }
 0x5eb   :  { %v1010_v9 = vmul.f32 %v2111_v2, %v1009_v5  ;;  %2006 = vmatpush.xpose.msk.msrb.mxu2 %vm125_vm1, %v1209_v8 }
 0x5ed   :  { %v1011_v13 = vadd.f32 %v2111_v2, %v1010_v9 }
 0x5ef   :  { %v1015_v17 = vsel %vm1014_vm4, %v2111_v2, %v1011_v13  ;;  %v1237_v54 = vpop.permute.xlu2 %1236 }
 0x5f0   :  { %v1020_v19 = vsel %vm1017_vm5, %v1019_v15, %v1015_v17 }
 0x5f1   :  { %v1050_v21 = vmul.f32 %v2105_v43, %v1020_v19 }
 0x5f2   :  { %v2060_v22 = vpop.permute.xlu0 %2059 }
 0x5f3   :  { %v2062_v23 = vunpack.i.h.bf16 %v2060_v22  ;;  %v2061_v24 = vunpack.i.l.bf16 %v2060_v22  ;;  %v2581_v58 = vadd.f32 %v1050_v21, %v652_v61 }
 0x5f5   :  { %1104 = vmatpush.msra.mxu0 %v2061_v24  ;;  %1130 = vmatpush.msrb.mxu3 %v2062_v23 }
 0x5f6   :  { %1999 = vmatmul.msk.f32.vlgmr.msra.gmra.mxu0 %vm125_vm1, %v1050_v21 }
 0x5f7   :  { %v1265_v21 = vpop.permute.xlu2 %1264 }
 0x5f9   :  { %1262 = vrot.lane.b32.xlu0 %v2371_v14, %s2248_s16  ;;  %v2595_v14 = vmul.f32 0.35355338, %v2456_v60 }
 0x5fa   :  { %v2600_v32 = vpop.permute.xlu0 %1234 }
 0x5fb   :  { %v555_v31 = vsel %vm125_vm1, %v2595_v14, -inf }
 0x5fd   :  { %1206 = vrot.lane.b32.xlu1 %v2365_v10, %s2248_s16 }
 0x627   :  { %982 = vadd.xlane.f32.xlu1 %v981_v46 }
 0x640   :  { %1135 = vrot.lane.b32.xlu1 %v2374_v16, %s2247_s15 }
 0x648   :  { %1292 = vrot.lane.b32.xlu1 %v2374_v16, %s2246_s30 }
 0x657   :  { %v992_v27 = vpop.xlane.xlu1 %991 }
 0x658   :  { %v989_v33 = vpop.xlane.xlu0 %988  ;;  %2114 = vrcp.f32 %v992_v27  ;;  %vm1040_vm9 = vweird.f32 %v992_v27  ;;  %v1044_v56 = vand.u32 2147483647, %v992_v27  ;;  %v1046_v62 = vand.u32 2147483648, %v992_v27 }
 0x659   :  { %2116 = vrcp.f32 %v989_v33  ;;  %v1032_v3 = vand.u32 2147483648, %v989_v33  ;;  %vm1026_vm14 = vweird.f32 %v989_v33  ;;  %v1030_v7 = vand.u32 2147483647, %v989_v33 }
 0x65a   :  { %v1047_v9 = vor.u32 1.1754944e-38, %v1046_v62  ;;  %vm1045_vm2 = vcmp.eq.f32.partialorder %v1044_v56, 8.507059e+37 }
 0x65b   :  { %v1033_v15 = vor.u32 1.1754944e-38, %v1032_v3  ;;  %vm1031_vm3 = vcmp.eq.f32.partialorder %v1030_v7, 8.507059e+37 }
 0x65e   :  { %v2115_v34 = vpop.eup %2114 }
 0x65f   :  { %v2117_v36 = vpop.eup %2116  ;;  %v1036_v37 = vmul.f32 %v2115_v34, %v992_v27  ;;  %vm1041_vm7 = vweird.f32 %v2115_v34 }
 0x660   :  { %v1022_v38 = vmul.f32 %v2117_v36, %v989_v33  ;;  %vm1027_vm11 = vweird.f32 %v2117_v36  ;;  %vm1042_vm13 = vmor %vm1040_vm9, %vm1041_vm7 }
 0x661   :  { %v1037_v60 = vsub.f32 1.0, %v1036_v37  ;;  %vm1028_vm15 = vmor %vm1026_vm14, %vm1027_vm11 }
 0x662   :  { %v1023_v40 = vsub.f32 1.0, %v1022_v38 }
 0x663   :  { %v1038_v42 = vmul.f32 %v2115_v34, %v1037_v60 }
 0x664   :  { %v1024_v48 = vmul.f32 %v2117_v36, %v1023_v40 }
 0x665   :  { %v1039_v51 = vadd.f32 %v2115_v34, %v1038_v42 }
 0x666   :  { %v1025_v1 = vadd.f32 %v2117_v36, %v1024_v48 }
 0x667   :  { %v1043_v5 = vsel %vm1042_vm13, %v2115_v34, %v1039_v51 }
 0x668   :  { %v1029_v11 = vsel %vm1028_vm15, %v2117_v36, %v1025_v1  ;;  %v1048_v13 = vsel %vm1045_vm2, %v1047_v9, %v1043_v5 }
 0x669   :  { %v1034_v17 = vsel %vm1031_vm3, %v1033_v15, %v1029_v11  ;;  %v2608_v61 = vmul.f32 %v2570_v63, %v1048_v13  ;;  %v1291_v63 = vpop.permute.xlu2 %1290 }
 0x66a   :  { %v2613_v22 = vmul.f32 %v2572_v12, %v1034_v17  ;;  %v2625_v12 = vpop.f32.mrf.mxu2 }
 0x66b   :  { %v1263_v24 = vpop.permute.xlu0 %1262 }
 0x66f   :  { %v1207_v59 = vpop.permute.xlu1 %1206 }
 0x670   :  { %2007 = vmatmul.msk.f32.vlgmr.msrb.gmra.mxu2 %vm125_vm1, %v1207_v59 }
 0x672   :  { %556 = vmax.xlane.f32.xlu1 %v555_v31  ;;  %v2627_v26 = vpop.f32.mrf.mxu2 }
 0x673   :  { %v2638_v36 = vpop.f32.mrf.mxu0 }
 0x67a   :  { %v2629_v46 = vpop.f32.mrf.mxu2 }
 0x69a   :  { %v983_v35 = vpop.xlane.xlu1 %982 }
 0x69b   :  { %2118 = vrcp.f32 %v983_v35  ;;  %v1004_v44 = vand.u32 2147483648, %v983_v35  ;;  %v1002_v50 = vand.u32 2147483647, %v983_v35  ;;  %vm998_vm8 = vweird.f32 %v983_v35 }
 0x69d   :  { %v1005_v57 = vor.u32 1.1754944e-38, %v1004_v44  ;;  %vm1003_vm12 = vcmp.eq.f32.partialorder %v1002_v50, 8.507059e+37 }
 0x6a1   :  { %v2119_v39 = vpop.eup %2118 }
 0x6a2   :  { %v994_v41 = vmul.f32 %v2119_v39, %v983_v35  ;;  %vm999_vm6 = vweird.f32 %v2119_v39 }
 0x6a3   :  { %vm1000_vm10 = vmor %vm998_vm8, %vm999_vm6 }
 0x6a4   :  { %v995_v43 = vsub.f32 1.0, %v994_v41 }
 0x6a6   :  { %v996_v49 = vmul.f32 %v2119_v39, %v995_v43 }
 0x6a8   :  { %v997_v52 = vadd.f32 %v2119_v39, %v996_v49 }
 0x6aa   :  { %v1001_v2 = vsel %vm1000_vm10, %v2119_v39, %v997_v52 }
 0x6ab   :  { %v1006_v0 = vsel %vm1003_vm12, %v1005_v57, %v1001_v2 }
 0x6ac   :  { %v2602_v8 = vmul.f32 %v2113_v30, %v1006_v0 }
 0x6ae   :  { %1998 = vmatmul.msk.f32.vlgmr.msra.gmra.mxu3 %vm125_vm1, %v2602_v8 }
 0x6af   :  { %2008 = vmatpush.xpose.msk.msra.mxu3 %vm125_vm1, %v1237_v54 }
 0x6b2   :  { %v1136_v19 = vpop.permute.xlu1 %1135 }
 0x6b3   :  { %1156 = vmatpush.msrb.mxu0 %v1136_v19 }
 0x6b4   :  { %2001 = vmatmul.msk.f32.vlgmr.msrb.gmra.mxu0 %vm125_vm1, %v2608_v61 }
 0x6b5   :  { %2010 = vmatpush.xpose.msk.msra.mxu0 %vm125_vm1, %v1265_v21 }
 0x6b6   :  { %2000 = vmatmul.msk.f32.vlgmr.msrb.gmra.mxu3 %vm125_vm1, %v2613_v22 }
 0x6ba   :  { %v1293_v23 = vpop.permute.xlu1 %1292 }
 0x6bb   :  { %2012 = vmatpush.xpose.msk.msra.mxu2 %vm125_vm1, %v1293_v23 }
 0x6bc   :  { %2011 = vmatmul.msk.f32.vlgmr.msra.gmra.mxu0 %vm125_vm1, %v1263_v24 }
 0x6be   :  { %2009 = vmatmul.msk.f32.vlgmr.msra.gmra.mxu3 %vm125_vm1, %v2600_v32  ;;  %2013 = vmatmul.msk.f32.vlgmr.msra.gmra.mxu2 %vm125_vm1, %v1291_v63 }
 0x6e5   :  { %v557_v30 = vpop.xlane.xlu1 %556 }
 0x6e6   :  { %v567_v27 = vsub.f32 %v2595_v14, %v557_v30 }
 0x6e8   :  { %v571_v59 = vmul.f32 1.442695, %v567_v27 }
 0x6ea   :  { %2120 = vpow2.f32 %v571_v59 }
 0x6f0   :  { %v2121_v32 = vpop.eup %2120 }
 0x6f1   :  { %v579_v35 = vsel %vm125_vm1, %v2121_v32, 0.0 }
 0x6f3   :  { %v1231_v31 = vpop.f32.mrf.mxu2 }
 0x6f4   :  { %v1318_v33 = vmul.f32 0.35355338, %v1231_v31 }
 0x6f6   :  { %v1322_v34 = vsel %vm125_vm1, %v1318_v33, -inf }
 0x6f7   :  { %1323 = vmax.xlane.f32.xlu0 %v1322_v34 }
 0x6ff   :  { %580 = vadd.xlane.f32.xlu0 %v579_v35 }
 0x713   :  { %655 = vrot.lane.b32.xlu0 %v2365_v10, %s2243_s7  ;;  %s1936_s7 = sshll.u32 %s2871_s14, 4  ;;  %s1937_s7 = int_to_ptr.hbm [resolvable:$true] %s1936_s7 }
 0x71b   :  { %2064 = vrot.lane.b32.xlu0 %v2556_v45, %s2249_s1 }
 0x731   :  { %v2640_v14 = vpop.f32.mrf.mxu3  ;;  %v2642_v37 = vpop.f32.mrf.mxu0 }
 0x739   :  { %v2644_v38 = vpop.f32.mrf.mxu3  ;;  %v1287_v60 = vpop.f32.mrf.mxu0 }
 0x73a   :  { %v1320_v39 = vmul.f32 0.35355338, %v1287_v60 }
 0x73c   :  { %v1328_v40 = vsel %vm125_vm1, %v1320_v39, -inf }
 0x73d   :  { %1329 = vmax.xlane.f32.xlu1 %v1328_v40 }
 0x741   :  { %v1259_v41 = vpop.f32.mrf.mxu3  ;;  %v1315_v44 = vpop.f32.mrf.mxu2 }
 0x742   :  { %v1319_v42 = vmul.f32 0.35355338, %v1259_v41  ;;  %v1321_v45 = vmul.f32 0.35355338, %v1315_v44  ;;  %v120_v41 = vld [vmem:[%s2860_s3 + $0x10] sm:$0xff] }
 0x744   :  { %v1325_v43 = vsel %vm125_vm1, %v1319_v42, -inf  ;;  %v1331_v48 = vsel %vm125_vm1, %v1321_v45, -inf }
 0x745   :  { %1326 = vmax.xlane.f32.xlu2 %v1325_v43 }
 0x74d   :  { %1332 = vmax.xlane.f32.xlu2 %v1331_v48 }
 0x76a   :  { %v1324_v49 = vpop.xlane.xlu0 %1323 }
 0x76b   :  { %v1334_v50 = vsub.f32 %v1318_v33, %v1324_v49 }
 0x76d   :  { %v1338_v51 = vmul.f32 1.442695, %v1334_v50 }
 0x76f   :  { %2122 = vpow2.f32 %v1338_v51 }
 0x772   :  { %v581_v52 = vpop.xlane.xlu0 %580 }
 0x773   :  { %2124 = vrcp.f32 %v581_v52  ;;  %v602_v2 = vand.u32 2147483648, %v581_v52  ;;  %v600_v0 = vand.u32 2147483647, %v581_v52  ;;  %vm596_vm5 = vweird.f32 %v581_v52 }
 0x775   :  { %v2649_v54 = vpop.eup %2122  ;;  %v603_v7 = vor.u32 1.1754944e-38, %v602_v2  ;;  %vm601_vm7 = vcmp.eq.f32.partialorder %v600_v0, 8.507059e+37 }
 0x776   :  { %v1346_v56 = vsel %vm125_vm1, %v2649_v54, 0.0 }
 0x777   :  { %1347 = vadd.xlane.f32.xlu1 %v1346_v56 }
 0x779   :  { %v2125_v62 = vpop.eup %2124 }
 0x77a   :  { %v592_v57 = vmul.f32 %v2125_v62, %v581_v52  ;;  %vm597_vm4 = vweird.f32 %v2125_v62 }
 0x77b   :  { %vm598_vm6 = vmor %vm596_vm5, %vm597_vm4 }
 0x77c   :  { %v593_v1 = vsub.f32 1.0, %v592_v57 }
 0x77e   :  { %v594_v3 = vmul.f32 %v2125_v62, %v593_v1 }
 0x780   :  { %v595_v5 = vadd.f32 %v2125_v62, %v594_v3 }
 0x782   :  { %v599_v9 = vsel %vm598_vm6, %v2125_v62, %v595_v5 }
 0x783   :  { %v604_v11 = vsel %vm601_vm7, %v603_v7, %v599_v9 }
 0x784   :  { %v647_v13 = vmul.f32 %v2121_v32, %v604_v11 }
 0x785   :  { %v656_v15 = vpop.permute.xlu0 %655 }
 0x786   :  { %676 = vmatpush.msrb.mxu1 %v656_v15  ;;  %v651_v51 = vadd.f32 %v647_v13, %v2426_v20 }
 0x787   :  { %1978 = vmatmul.msk.f32.vlgmr.msrb.gmra.mxu1 %vm125_vm1, %v647_v13 }
 0x788   :  { %786 = vmatpush.msra.mxu1 %v2506_v53 }
 0x78a   :  { %1188 = vmatpush.msrb.mxu1 %v120_v41 }
 0x78d   :  { %v2065_v17 = vpop.permute.xlu0 %2064 }
 0x78e   :  { %v2067_v19 = vunpack.i.h.bf16 %v2065_v17  ;;  %v2066_v21 = vunpack.i.l.bf16 %v2065_v17 }
 0x790   :  { %1469 = vmatpush.msrb.mxu0 %v2066_v21  ;;  %1495 = vmatpush.msrb.mxu2 %v2067_v19 }
 0x7b0   :  { %v1330_v23 = vpop.xlane.xlu1 %1329 }
 0x7b1   :  { %v1336_v24 = vsub.f32 %v1320_v39, %v1330_v23 }
 0x7b3   :  { %v1342_v63 = vmul.f32 1.442695, %v1336_v24 }
 0x7b5   :  { %2126 = vpow2.f32 %v1342_v63 }
 0x7b8   :  { %v1327_v30 = vpop.xlane.xlu2 %1326 }
 0x7b9   :  { %v1335_v27 = vsub.f32 %v1319_v42, %v1327_v30 }
 0x7bb   :  { %v2655_v59 = vpop.eup %2126  ;;  %v1340_v31 = vmul.f32 1.442695, %v1335_v27 }
 0x7bc   :  { %v1352_v33 = vsel %vm125_vm1, %v2655_v59, 0.0 }
 0x7bd   :  { %2128 = vpow2.f32 %v1340_v31  ;;  %1353 = vadd.xlane.f32.xlu1 %v1352_v33 }
 0x7c0   :  { %v1333_v53 = vpop.xlane.xlu2 %1332 }
 0x7c1   :  { %v1337_v34 = vsub.f32 %v1321_v45, %v1333_v53 }
 0x7c3   :  { %v2659_v32 = vpop.eup %2128  ;;  %v1344_v35 = vmul.f32 1.442695, %v1337_v34 }
 0x7c4   :  { %v1349_v60 = vsel %vm125_vm1, %v2659_v32, 0.0 }
 0x7c5   :  { %2130 = vpow2.f32 %v1344_v35  ;;  %1350 = vadd.xlane.f32.xlu2 %v1349_v60 }
 0x7cb   :  { %v2663_v39 = vpop.eup %2130 }
 0x7cc   :  { %v1355_v40 = vsel %vm125_vm1, %v2663_v39, 0.0 }
 0x7cd   :  { %1356 = vadd.xlane.f32.xlu1 %v1355_v40 }
 0x7dd   :  { %1422 = vrot.lane.b32.xlu2 %v2365_v10, %s2249_s1 }
 0x7e6   :  { %1500 = vrot.lane.b32.xlu1 %v2374_v16, %s2249_s1  ;;  %v1053_v16 = vadd.f32 %v2602_v8, %v651_v51 }
 0x7ea   :  { %v1348_v42 = vpop.xlane.xlu1 %1347 }
 0x7eb   :  { %2132 = vrcp.f32 %v1348_v42  ;;  %v1369_v48 = vand.u32 2147483648, %v1348_v42  ;;  %v1367_v50 = vand.u32 2147483647, %v1348_v42  ;;  %vm1363_vm9 = vweird.f32 %v1348_v42 }
 0x7ed   :  { %v1370_v52 = vor.u32 1.1754944e-38, %v1369_v48  ;;  %vm1368_vm11 = vcmp.eq.f32.partialorder %v1367_v50, 8.507059e+37  ;;  %v654_v50 = vadd.f32 %v2510_v6, %v2445_v55  ;;  %v121_v55 = vld [vmem:[%s2860_s3 + $0x18] sm:$0xff] }
 0x7ee   :  { %1553 = vmatpush.msra.mxu0 %v121_v55  ;;  %v1691_v55 = vld [vmem:[#allocation2 + $0x8] sm:$0xff] }
 0x7f1   :  { %v2133_v43 = vpop.eup %2132 }
 0x7f2   :  { %v1359_v44 = vmul.f32 %v2133_v43, %v1348_v42  ;;  %vm1364_vm8 = vweird.f32 %v2133_v43 }
 0x7f3   :  { %vm1365_vm10 = vmor %vm1363_vm9, %vm1364_vm8 }
 0x7f4   :  { %v1360_v45 = vsub.f32 1.0, %v1359_v44 }
 0x7f6   :  { %v1361_v49 = vmul.f32 %v2133_v43, %v1360_v45 }
 0x7f8   :  { %v1362_v10 = vadd.f32 %v2133_v43, %v1361_v49 }
 0x7fa   :  { %v1366_v56 = vsel %vm1365_vm10, %v2133_v43, %v1362_v10  ;;  %v1056_v10 = vadd.f32 %v2608_v61, %v654_v50 }
 0x7fb   :  { %v1371_v62 = vsel %vm1368_vm11, %v1370_v52, %v1366_v56 }
 0x7fc   :  { %v1414_v57 = vmul.f32 %v2649_v54, %v1371_v62 }
 0x7fe   :  { %v1418_v1 = vadd.f32 %v1414_v57, %v1053_v16 }
 0x800   :  { %v1909_v2 = vmul.f32 0.25, %v1418_v1 }
 0x802   :  { %1913 = vst.msk [vmem:[#allocation6] sm:$0xff] %vm125_vm1, %v1909_v2 }
 0x804   :  { %v678_v3 = vpop.f32.mrf.mxu1 }
 0x805   :  { %1982 = vmatmul.msk.f32.vlgmr.msra.gmra.mxu1 %vm125_vm1, %v678_v3 }
 0x80d   :  { %2002 = vmatmul.msk.f32.vlgmr.msrb.gmra.mxu1 %vm125_vm1, %v2640_v14 }
 0x815   :  { %2003 = vmatmul.msk.f32.gmra.mxu1 %vm125_vm1, %v2638_v36 }
 0x81d   :  { %2004 = vmatmul.msk.f32.gmra.mxu1 %vm125_vm1, %v2644_v38  ;;  %v653_v38 = vadd.f32 %v2517_v18, %v2439_v47 }
 0x81f   :  { %v1055_v23 = vadd.f32 %v2613_v22, %v653_v38  ;;  %v836_v38 = vadd.f32 %v2627_v26, %v2541_v28  ;;  %v2250_v26 = vmov 32.0  }
 0x825   :  { %2005 = vmatmul.msk.f32.gmra.mxu1 %vm125_vm1, %v2642_v37 }
 0x830   :  { %v1354_v20 = vpop.xlane.xlu1 %1353 }
 0x831   :  { %2134 = vrcp.f32 %v1354_v20  ;;  %v1397_v7 = vand.u32 2147483648, %v1354_v20  ;;  %v1395_v14 = vand.u32 2147483647, %v1354_v20  ;;  %vm1391_vm13 = vweird.f32 %v1354_v20 }
 0x833   :  { %v1398_v13 = vor.u32 1.1754944e-38, %v1397_v7  ;;  %vm1396_vm15 = vcmp.eq.f32.partialorder %v1395_v14, 8.507059e+37  ;;  %v833_v7 = vadd.f32 %v2625_v12, %v2539_v4  ;;  %v839_v4 = vadd.f32 %v2629_v46, %v2543_v29 }
 0x837   :  { %v2135_v8 = vpop.eup %2134 }
 0x838   :  { %v1387_v54 = vmul.f32 %v2135_v8, %v1354_v20  ;;  %v1351_v0 = vpop.xlane.xlu2 %1350  ;;  %vm1392_vm12 = vweird.f32 %v2135_v8  ;;  %v2069_v20 = vld [vmem:[%s2861_s4] ss:$0 sm:$0xff] }
 0x839   :  { %2136 = vrcp.f32 %v1351_v0  ;;  %vm1393_vm14 = vmor %vm1391_vm13, %vm1392_vm12  ;;  %v1383_v30 = vand.u32 2147483648, %v1351_v0  ;;  %v1381_v31 = vand.u32 2147483647, %v1351_v0  ;;  %vm1377_vm3 = vweird.f32 %v1351_v0 }
 0x83a   :  { %v1388_v5 = vsub.f32 1.0, %v1387_v54 }
 0x83b   :  { %v1384_v34 = vor.u32 1.1754944e-38, %v1383_v30  ;;  %vm1382_vm5 = vcmp.eq.f32.partialorder %v1381_v31, 8.507059e+37 }
 0x83c   :  { %v1389_v9 = vmul.f32 %v2135_v8, %v1388_v5 }
 0x83e   :  { %v1390_v11 = vadd.f32 %v2135_v8, %v1389_v9 }
 0x83f   :  { %v2137_v36 = vpop.eup %2136 }
 0x840   :  { %v1394_v37 = vsel %vm1393_vm14, %v2135_v8, %v1390_v11  ;;  %v1373_v15 = vmul.f32 %v2137_v36, %v1351_v0  ;;  %v1357_v17 = vpop.xlane.xlu1 %1356  ;;  %v1423_v19 = vpop.permute.xlu2 %1422  ;;  %vm1378_vm2 = vweird.f32 %v2137_v36 }
 0x841   :  { %v1399_v21 = vsel %vm1396_vm15, %v1398_v13, %v1394_v37  ;;  %2138 = vrcp.f32 %v1357_v17  ;;  %1443 = vmatpush.msrb.mxu3 %v1423_v19  ;;  %vm1379_vm4 = vmor %vm1377_vm3, %vm1378_vm2  ;;  %v1411_v41 = vand.u32 2147483648, %v1357_v17  ;;  %v1409_v43 = vand.u32 2147483647, %v1357_v17 }
 0x842   :  { %v1374_v24 = vsub.f32 1.0, %v1373_v15  ;;  %2014 = vmatmul.msk.f32.vlgmr.msrb.gmra.mxu3 %vm125_vm1, %v1414_v57  ;;  %v1416_v63 = vmul.f32 %v2655_v59, %v1399_v21  ;;  %vm1405_vm7 = vweird.f32 %v1357_v17  ;;  %2140 = vrcp.f32 %v2250_v26 }
 0x843   :  { %v1412_v49 = vor.u32 1.1754944e-38, %v1411_v41  ;;  %vm1410_vm9 = vcmp.eq.f32.partialorder %v1409_v43, 8.507059e+37 }
 0x844   :  { %v1375_v27 = vmul.f32 %v2137_v36, %v1374_v24  ;;  %v1420_v47 = vadd.f32 %v1416_v63, %v1055_v23  ;;  %2016 = vmatmul.msk.f32.vlgmr.msrb.gmra.mxu2 %vm125_vm1, %v1416_v63 }
 0x846   :  { %v1376_v18 = vadd.f32 %v2137_v36, %v1375_v27  ;;  %v1911_v33 = vmul.f32 0.25, %v1420_v47 }
 0x847   :  { %v2139_v53 = vpop.eup %2138 }
 0x848   :  { %v1380_v35 = vsel %vm1379_vm4, %v2137_v36, %v1376_v18  ;;  %v1401_v22 = vmul.f32 %v2139_v53, %v1357_v17  ;;  %1915 = vst.msk [vmem:[#allocation6 + $0x10] sm:$0xff] %vm125_vm1, %v1911_v33  ;;  %vm1406_vm6 = vweird.f32 %v2139_v53  ;;  %v2141_v31 = vpop.eup %2140 }
 0x849   :  { %v1385_v60 = vsel %vm1382_vm5, %v1384_v34, %v1380_v35  ;;  %vm1407_vm8 = vmor %vm1405_vm7, %vm1406_vm6  ;;  %v1594_v47 = vmul.f32 32.0, %v2141_v31 }
 0x84a   :  { %v1402_v59 = vsub.f32 1.0, %v1401_v22  ;;  %v1415_v40 = vmul.f32 %v2659_v32, %v1385_v60 }
 0x84b   :  { %v1595_v18 = vsub.f32 1.0, %v1594_v47 }
 0x84c   :  { %v1403_v42 = vmul.f32 %v2139_v53, %v1402_v59  ;;  %v1419_v44 = vadd.f32 %v1415_v40, %v2581_v58  ;;  %2015 = vmatmul.msk.f32.vlgmr.msrb.gmra.mxu0 %vm125_vm1, %v1415_v40 }
 0x84d   :  { %v1596_v33 = vmul.f32 %v2141_v31, %v1595_v18 }
 0x84e   :  { %v1404_v45 = vadd.f32 %v2139_v53, %v1403_v42  ;;  %v1910_v48 = vmul.f32 0.25, %v1419_v44 }
 0x850   :  { %v1408_v51 = vsel %vm1407_vm8, %v2139_v53, %v1404_v45  ;;  %1914 = vst.msk [vmem:[#allocation6 + $0x8] sm:$0xff] %vm125_vm1, %v1910_v48  ;;  %v1597_v53 = vadd.f32 %v2141_v31, %v1596_v33  ;;  %vm1755_vm8 = vcmask 523264  }
 0x851   :  { %v1413_v32 = vsel %vm1410_vm9, %v1412_v49, %v1408_v51 }
 0x852   :  { %v1417_v52 = vmul.f32 %v2663_v39, %v1413_v32 }
 0x854   :  { %v1421_v58 = vadd.f32 %v1417_v52, %v1056_v10 }
 0x856   :  { %v1912_v56 = vmul.f32 0.25, %v1421_v58 }
 0x858   :  { %v1501_v62 = vpop.permute.xlu1 %1500  ;;  %1916 = vst.msk [vmem:[#allocation6 + $0x18] sm:$0xff] %vm125_vm1, %v1912_v56  ;;  %v1693_v56 = vld [vmem:[#allocation2 + $0x18] sm:$0xff] }
 0x859   :  { %1521 = vmatpush.msra.mxu3 %v1501_v62  ;;  %1722 = vmatpush.msra.mxu2 %v1693_v56  ;;  %v1692_v62 = vld [vmem:[#allocation2 + $0x10] sm:$0xff] }
 0x85a   :  { %2017 = vmatmul.msk.f32.vlgmr.msra.gmra.mxu3 %vm125_vm1, %v1417_v52 }
 0x85b   :  { %1723 = vmatpush.msra.mxu2 %v1692_v62 }
 0x85d   :  { %1724 = vmatpush.msra.mxu2 %v1691_v55  ;;  %v1744_v55 = vld [vmem:[%s2866_s9 + $0x8] sm:$0xff] }
 0x882   :  { %v788_v57 = vpop.f32.mrf.mxu1 }
 0x883   :  { %v830_v2 = vadd.f32 %v2623_v25, %v788_v57 }
 0x88a   :  { %v1190_v1 = vpop.f32.mrf.mxu1 }
 0x88b   :  { %v1202_v3 = vadd.f32 %v1190_v1, %v830_v2 }
 0x892   :  { %v1193_v8 = vpop.f32.mrf.mxu1 }
 0x893   :  { %v1203_v14 = vadd.f32 %v1193_v8, %v833_v7 }
 0x89a   :  { %v1196_v13 = vpop.f32.mrf.mxu1 }
 0x89b   :  { %v1204_v15 = vadd.f32 %v1196_v13, %v836_v38  ;;  %v1749_v38 = vld [vmem:[%s2866_s9 + $0x30] sm:$0xff] }
 0x8a2   :  { %v1199_v23 = vpop.f32.mrf.mxu1 }
 0x8a3   :  { %v1205_v24 = vadd.f32 %v1199_v23, %v839_v4 }
 0x8c5   :  { %v1445_v6 = vpop.f32.mrf.mxu3 }
 0x8c6   :  { %2018 = vmatmul.msk.f32.vlgmr.msra.gmra.mxu0 %vm125_vm1, %v1445_v6  ;;  %v1690_v6 = vld [vmem:[#allocation2] sm:$0xff] }
 0x8c7   :  { %v1497_v61 = vpop.f32.mrf.mxu2  ;;  %1725 = vmatpush.msra.mxu2 %v1690_v6  ;;  %v1743_v6 = vld [vmem:[%s2866_s9] sm:$0xff] }
 0x8c9   :  { %v1471_v16 = vpop.f32.mrf.mxu0 }
 0x8ce   :  { %2019 = vmatmul.msk.f32.gmra.mxu0 %vm125_vm1, %v1471_v16 }
 0x8d6   :  { %2020 = vmatmul.msk.f32.gmra.mxu0 %vm125_vm1, %v1497_v61 }
 0x8dd   :  { %v1523_v39 = vpop.f32.mrf.mxu3 }
 0x8de   :  { %2021 = vmatmul.msk.f32.gmra.mxu0 %vm125_vm1, %v1523_v39  ;;  %vm1598_vm1 = vweird.f32 %v2141_v31 }
 0x8df   :  { %v2725_v34 = vsel %vm1598_vm1, %v2141_v31, %v1597_v53  ;;  %v1746_v31 = vld [vmem:[%s2866_s9 + $0x18] sm:$0xff] }
 0x943   :  { %v1555_v54 = vpop.f32.mrf.mxu0 }
 0x944   :  { %v1567_v0 = vadd.f32 %v1555_v54, %v1202_v3 }
 0x946   :  { %v1575_v5 = vadd.f32 %v2069_v20, %v1567_v0 }
 0x948   :  { %v1581_v9 = vsel %vm76_vm0, %v1575_v5, 0.0 }
 0x949   :  { %1582 = vadd.xlane.f32.xlu0 %v1581_v9 }
 0x94b   :  { %v1558_v11 = vpop.f32.mrf.mxu0 }
 0x94c   :  { %v1568_v36 = vadd.f32 %v1558_v11, %v1203_v14  ;;  %v2753_v11 = vld [vmem:[%s2862_s5] ss:$0 sm:$0xff] }
 0x94e   :  { %v1576_v25 = vadd.f32 %v2069_v20, %v1568_v36 }
 0x950   :  { %v1584_v37 = vsel %vm76_vm0, %v1576_v25, 0.0 }
 0x951   :  { %1585 = vadd.xlane.f32.xlu2 %v1584_v37 }
 0x953   :  { %v1561_v17 = vpop.f32.mrf.mxu0 }
 0x954   :  { %v1569_v19 = vadd.f32 %v1561_v17, %v1204_v15 }
 0x956   :  { %v1577_v21 = vadd.f32 %v2069_v20, %v1569_v19  ;;  %v2071_v19 = vld [vmem:[%s2863_s6] ss:$0 sm:$0xff] }
 0x958   :  { %v1587_v12 = vsel %vm76_vm0, %v1577_v21, 0.0 }
 0x959   :  { %1588 = vadd.xlane.f32.xlu1 %v1587_v12 }
 0x95b   :  { %v1564_v63 = vpop.f32.mrf.mxu0 }
 0x95c   :  { %v1570_v30 = vadd.f32 %v1564_v63, %v1205_v24  ;;  %v1747_v63 = vld [vmem:[%s2866_s9 + $0x20] sm:$0xff] }
 0x95e   :  { %v1578_v27 = vadd.f32 %v2069_v20, %v1570_v30 }
 0x960   :  { %v1590_v28 = vsel %vm76_vm0, %v1578_v27, 0.0 }
 0x961   :  { %1591 = vadd.xlane.f32.xlu0 %v1590_v28 }
 0x9bc   :  { %v1583_v29 = vpop.xlane.xlu0 %1582 }
 0x9bd   :  { %v1600_v46 = vmul.f32 %v2725_v34, %v1583_v29 }
 0x9bf   :  { %v1604_v35 = vsub.f32 %v1575_v5, %v1600_v46 }
 0x9c1   :  { %v1608_v22 = vmul.f32 %v1604_v35, %v1604_v35 }
 0x9c3   :  { %v1612_v60 = vsel %vm76_vm0, %v1608_v22, 0.0 }
 0x9c4   :  { %1613 = vadd.xlane.f32.xlu2 %v1612_v60  ;;  %v1586_v59 = vpop.xlane.xlu2 %1585 }
 0x9c5   :  { %v1601_v40 = vmul.f32 %v2725_v34, %v1586_v59 }
 0x9c7   :  { %v2730_v41 = vsub.f32 %v1576_v25, %v1601_v40  ;;  %v1750_v25 = vld [vmem:[%s2866_s9 + $0x38] sm:$0xff] }
 0x9c8   :  { %1776 = vmatpush.msra.mxu1 %v1750_v25 }
 0x9c9   :  { %v1609_v42 = vmul.f32 %v2730_v41, %v2730_v41 }
 0x9ca   :  { %1777 = vmatpush.msra.mxu1 %v1749_v38 }
 0x9cb   :  { %v1615_v43 = vsel %vm76_vm0, %v1609_v42, 0.0 }
 0x9cc   :  { %v1589_v44 = vpop.xlane.xlu1 %1588  ;;  %1616 = vadd.xlane.f32.xlu0 %v1615_v43 }
 0x9cd   :  { %v1602_v45 = vmul.f32 %v2725_v34, %v1589_v44 }
 0x9cf   :  { %v2736_v48 = vsub.f32 %v1577_v21, %v1602_v45  ;;  %v1748_v21 = vld [vmem:[%s2866_s9 + $0x28] sm:$0xff] }
 0x9d0   :  { %1778 = vmatpush.msra.mxu1 %v1748_v21 }
 0x9d1   :  { %v1610_v49 = vmul.f32 %v2736_v48, %v2736_v48 }
 0x9d2   :  { %1779 = vmatpush.msra.mxu1 %v1747_v63 }
 0x9d3   :  { %v1618_v50 = vsel %vm76_vm0, %v1610_v49, 0.0 }
 0x9d4   :  { %1619 = vadd.xlane.f32.xlu2 %v1618_v50  ;;  %v1592_v51 = vpop.xlane.xlu0 %1591  ;;  %1780 = vmatpush.msra.mxu1 %v1746_v31 }
 0x9d5   :  { %v1603_v32 = vmul.f32 %v2725_v34, %v1592_v51 }
 0x9d7   :  { %v2742_v10 = vsub.f32 %v1578_v27, %v1603_v32 }
 0x9d9   :  { %v1611_v52 = vmul.f32 %v2742_v10, %v2742_v10 }
 0x9db   :  { %v1621_v58 = vsel %vm76_vm0, %v1611_v52, 0.0 }
 0x9dc   :  { %1622 = vadd.xlane.f32.xlu0 %v1621_v58 }
 0xa37   :  { %v1614_v16 = vpop.xlane.xlu2 %1613 }
 0xa38   :  { %v1624_v61 = vmul.f32 %v1614_v16, %v2725_v34 }
 0xa3a   :  { %v1628_v39 = vadd.f32 1e-05, %v1624_v61 }
 0xa3c   :  { %2142 = vrsqrt.f32 %v1628_v39  ;;  %vm1638_vm11 = vweird.f32 %v1628_v39 }
 0xa3f   :  { %v1617_v57 = vpop.xlane.xlu0 %1616 }
 0xa40   :  { %v1625_v1 = vmul.f32 %v1617_v57, %v2725_v34 }
 0xa42   :  { %v2143_v2 = vpop.eup %2142  ;;  %v1629_v3 = vadd.f32 1e-05, %v1625_v1 }
 0xa43   :  { %v1633_v20 = vmul.f32 %v2143_v2, %v1628_v39  ;;  %vm1639_vm10 = vweird.f32 %v2143_v2 }
 0xa44   :  { %2144 = vrsqrt.f32 %v1629_v3  ;;  %vm1640_vm12 = vmor %vm1638_vm11, %vm1639_vm10  ;;  %vm1648_vm14 = vweird.f32 %v1629_v3 }
 0xa45   :  { %v1634_v8 = vmul.f32 %v2143_v2, %v1633_v20 }
 0xa47   :  { %v1635_v54 = vmul.f32 0.5, %v1634_v8  ;;  %v1620_v0 = vpop.xlane.xlu2 %1619 }
 0xa48   :  { %v1626_v5 = vmul.f32 %v1620_v0, %v2725_v34 }
 0xa49   :  { %v1636_v7 = vsub.f32 1.5, %v1635_v54 }
 0xa4a   :  { %v2145_v9 = vpop.eup %2144  ;;  %v1630_v14 = vadd.f32 1e-05, %v1626_v5 }
 0xa4b   :  { %v1637_v36 = vmul.f32 %v2143_v2, %v1636_v7  ;;  %v1643_v13 = vmul.f32 %v2145_v9, %v1629_v3  ;;  %vm1649_vm13 = vweird.f32 %v2145_v9  ;;  %v2073_v7 = vld [vmem:[%s2867_s10] ss:$0 sm:$0xff] }
 0xa4c   :  { %2146 = vrsqrt.f32 %v1630_v14  ;;  %vm1650_vm15 = vmor %vm1648_vm14, %vm1649_vm13  ;;  %vm1658_vm3 = vweird.f32 %v1630_v14 }
 0xa4d   :  { %v1641_v37 = vsel %vm1640_vm12, %v2143_v2, %v1637_v36  ;;  %v1644_v15 = vmul.f32 %v2145_v9, %v1643_v13 }
 0xa4e   :  { %v1672_v17 = vmul.f32 %v1641_v37, %v1604_v35 }
 0xa4f   :  { %v1645_v23 = vmul.f32 0.5, %v1644_v15  ;;  %v1623_v4 = vpop.xlane.xlu0 %1622 }
 0xa50   :  { %v1679_v12 = vmul.f32 %v2753_v11, %v1672_v17  ;;  %v1627_v24 = vmul.f32 %v1623_v4, %v2725_v34 }
 0xa51   :  { %v1646_v30 = vsub.f32 1.5, %v1645_v23 }
 0xa52   :  { %v2147_v27 = vpop.eup %2146  ;;  %v1631_v28 = vadd.f32 1e-05, %v1627_v24  ;;  %v2772_v26 = vadd.f32 %v2071_v19, %v1679_v12 }
 0xa53   :  { %v1647_v47 = vmul.f32 %v2145_v9, %v1646_v30  ;;  %v1653_v18 = vmul.f32 %v2147_v27, %v1630_v14  ;;  %vm1659_vm2 = vweird.f32 %v2147_v27 }
 0xa54   :  { %2148 = vrsqrt.f32 %v1631_v28  ;;  %2022 = vmatmul.msk.f32.vlgmr.msra.gmra.mxu2 %vm76_vm0, %v2772_v26  ;;  %vm1660_vm4 = vmor %vm1658_vm3, %vm1659_vm2  ;;  %vm1668_vm6 = vweird.f32 %v1631_v28 }
 0xa55   :  { %v1651_v33 = vsel %vm1650_vm15, %v2145_v9, %v1647_v47  ;;  %v1654_v53 = vmul.f32 %v2147_v27, %v1653_v18 }
 0xa56   :  { %v1673_v29 = vmul.f32 %v1651_v33, %v2730_v41 }
 0xa57   :  { %v1655_v46 = vmul.f32 0.5, %v1654_v53 }
 0xa58   :  { %v1680_v35 = vmul.f32 %v2753_v11, %v1673_v29 }
 0xa59   :  { %v1656_v22 = vsub.f32 1.5, %v1655_v46 }
 0xa5a   :  { %v2149_v60 = vpop.eup %2148  ;;  %v1687_v59 = vadd.f32 %v2071_v19, %v1680_v35 }
 0xa5b   :  { %v1657_v40 = vmul.f32 %v2147_v27, %v1656_v22  ;;  %v1663_v42 = vmul.f32 %v2149_v60, %v1631_v28  ;;  %vm1669_vm5 = vweird.f32 %v2149_v60 }
 0xa5c   :  { %2023 = vmatmul.msk.f32.gmra.mxu2 %vm76_vm0, %v1687_v59  ;;  %vm1670_vm7 = vmor %vm1668_vm6, %vm1669_vm5 }
 0xa5d   :  { %v1661_v43 = vsel %vm1660_vm4, %v2147_v27, %v1657_v40  ;;  %v1664_v44 = vmul.f32 %v2149_v60, %v1663_v42 }
 0xa5e   :  { %v1674_v45 = vmul.f32 %v1661_v43, %v2736_v48  ;;  %v1745_v48 = vld [vmem:[%s2866_s9 + $0x10] sm:$0xff] }
 0xa5f   :  { %v1665_v49 = vmul.f32 0.5, %v1664_v44  ;;  %1781 = vmatpush.msra.mxu1 %v1745_v48 }
 0xa60   :  { %v1681_v41 = vmul.f32 %v2753_v11, %v1674_v45 }
 0xa61   :  { %v1666_v50 = vsub.f32 1.5, %v1665_v49  ;;  %1782 = vmatpush.msra.mxu1 %v1744_v55 }
 0xa62   :  { %v1688_v51 = vadd.f32 %v2071_v19, %v1681_v41 }
 0xa63   :  { %v1667_v32 = vmul.f32 %v2149_v60, %v1666_v50  ;;  %1783 = vmatpush.msra.mxu1 %v1743_v6 }
 0xa64   :  { %2024 = vmatmul.msk.f32.gmra.mxu2 %vm76_vm0, %v1688_v51 }
 0xa65   :  { %v1671_v52 = vsel %vm1670_vm7, %v2149_v60, %v1667_v32 }
 0xa66   :  { %v1675_v58 = vmul.f32 %v1671_v52, %v2742_v10  ;;  %v2072_v10 = vld [vmem:[%s2865_s8] ss:$0 sm:$0xff]  ;;  %s2251_s8 = smov [#allocation6]  }
 0xa67   :  { %s1934_s10 = sshll.u32 %s2251_s8, 4  ;;  %s1935_s10 = int_to_ptr.vmem [resolvable:$true] %s1934_s10 }
 0xa68   :  { %v1682_v56 = vmul.f32 %v2753_v11, %v1675_v58  ;;  %1942 = dma.vmem_to_hbm [thread:$0]  %s1935_s10, 512, %s1937_s7, [#allocation7], %s2237_s18, %s2237_s18, %s2238_s19  }
 0xa6a   :  { %v1689_v62 = vadd.f32 %v2071_v19, %v1682_v56 }
 0xa6c   :  { %2025 = vmatmul.msk.f32.gmra.mxu2 %vm76_vm0, %v1689_v62 }
 0xad7   :  { %v1727_v16 = vpop.f32.mrf.mxu2 }
 0xad8   :  { %v1728_v61 = vadd.f32 %v2072_v10, %v1727_v16 }
 0xada   :  { %v1739_v39 = vmax.f32 %v1728_v61, 0.0 }
 0xadc   :  { %2026 = vmatmul.msk.f32.vlgmr.msra.gmra.mxu1 %vm1755_vm8, %v1739_v39 }
 0xadf   :  { %v1730_v57 = vpop.f32.mrf.mxu2 }
 0xae0   :  { %v1731_v1 = vadd.f32 %v2072_v10, %v1730_v57  ;;  %v2074_v57 = vld [vmem:[%s2868_s11] ss:$0 sm:$0xff]  ;;  %s2252_s11 = smov [#allocation5]  }
 0xae2   :  { %v1740_v2 = vmax.f32 %v1731_v1, 0.0 }
 0xae4   :  { %2027 = vmatmul.msk.f32.gmra.mxu1 %vm1755_vm8, %v1740_v2 }
 0xae7   :  { %v1733_v3 = vpop.f32.mrf.mxu2 }
 0xae8   :  { %v1734_v20 = vadd.f32 %v2072_v10, %v1733_v3  ;;  %v2075_v3 = vld [vmem:[%s2869_s12] ss:$0 sm:$0xff]  ;;  %s1921_s12 = sshll.u32 %s2252_s11, 4  ;;  %s1922_s12 = int_to_ptr.vmem [resolvable:$true] %s1921_s12 }
 0xaea   :  { %v1741_v8 = vmax.f32 %v1734_v20, 0.0 }
 0xaec   :  { %2028 = vmatmul.msk.f32.gmra.mxu1 %vm1755_vm8, %v1741_v8 }
 0xaef   :  { %v1736_v54 = vpop.f32.mrf.mxu2 }
 0xaf0   :  { %v1737_v0 = vadd.f32 %v2072_v10, %v1736_v54 }
 0xaf2   :  { %v1742_v5 = vmax.f32 %v1737_v0, 0.0 }
 0xaf4   :  { %2029 = vmatmul.msk.f32.gmra.mxu1 %vm1755_vm8, %v1742_v5 }
 0xb59   :  { %v1785_v9 = vpop.f32.mrf.mxu1 }
 0xb5a   :  { %v1786_v14 = vadd.f32 %v2073_v7, %v1785_v9 }
 0xb5c   :  { %v1797_v11 = vadd.f32 %v1786_v14, %v2772_v26 }
 0xb5e   :  { %v1803_v36 = vsel %vm76_vm0, %v1797_v11, 0.0 }
 0xb5f   :  { %1804 = vadd.xlane.f32.xlu2 %v1803_v36 }
 0xb61   :  { %v1788_v13 = vpop.f32.mrf.mxu1 }
 0xb62   :  { %v1789_v25 = vadd.f32 %v2073_v7, %v1788_v13 }
 0xb64   :  { %v1798_v38 = vadd.f32 %v1789_v25, %v1687_v59 }
 0xb66   :  { %v1806_v37 = vsel %vm76_vm0, %v1798_v38, 0.0 }
 0xb67   :  { %1807 = vadd.xlane.f32.xlu1 %v1806_v37 }
 0xb69   :  { %v1791_v15 = vpop.f32.mrf.mxu1 }
 0xb6a   :  { %v1792_v17 = vadd.f32 %v2073_v7, %v1791_v15 }
 0xb6c   :  { %v1799_v19 = vadd.f32 %v1792_v17, %v1688_v51 }
 0xb6e   :  { %v1809_v21 = vsel %vm76_vm0, %v1799_v19, 0.0 }
 0xb6f   :  { %1810 = vadd.xlane.f32.xlu0 %v1809_v21 }
 0xb71   :  { %v1794_v23 = vpop.f32.mrf.mxu1 }
 0xb72   :  { %v1795_v4 = vadd.f32 %v2073_v7, %v1794_v23 }
 0xb74   :  { %v1800_v12 = vadd.f32 %v1795_v4, %v1689_v62 }
 0xb76   :  { %v1812_v24 = vsel %vm76_vm0, %v1800_v12, 0.0 }
 0xb77   :  { %1813 = vadd.xlane.f32.xlu2 %v1812_v24 }
 0xbd2   :  { %v1805_v63 = vpop.xlane.xlu2 %1804 }
 0xbd3   :  { %v1815_v30 = vmul.f32 %v1805_v63, %v2725_v34 }
 0xbd5   :  { %v1819_v27 = vsub.f32 %v1797_v11, %v1815_v30 }
 0xbd7   :  { %v1823_v28 = vmul.f32 %v1819_v27, %v1819_v27 }
 0xbd9   :  { %v1827_v26 = vsel %vm76_vm0, %v1823_v28, 0.0 }
 0xbda   :  { %1828 = vadd.xlane.f32.xlu1 %v1827_v26  ;;  %v1808_v31 = vpop.xlane.xlu1 %1807 }
 0xbdb   :  { %v1816_v47 = vmul.f32 %v1808_v31, %v2725_v34 }
 0xbdd   :  { %v2811_v18 = vsub.f32 %v1798_v38, %v1816_v47 }
 0xbdf   :  { %v1824_v33 = vmul.f32 %v2811_v18, %v2811_v18 }
 0xbe1   :  { %v1830_v53 = vsel %vm76_vm0, %v1824_v33, 0.0 }
 0xbe2   :  { %1831 = vadd.xlane.f32.xlu0 %v1830_v53  ;;  %v1811_v29 = vpop.xlane.xlu0 %1810 }
 0xbe3   :  { %v1817_v46 = vmul.f32 %v1811_v29, %v2725_v34 }
 0xbe5   :  { %v2817_v35 = vsub.f32 %v1799_v19, %v1817_v46 }
 0xbe7   :  { %v1825_v22 = vmul.f32 %v2817_v35, %v2817_v35 }
 0xbe9   :  { %v1833_v60 = vsel %vm76_vm0, %v1825_v22, 0.0 }
 0xbea   :  { %v1814_v59 = vpop.xlane.xlu2 %1813  ;;  %1834 = vadd.xlane.f32.xlu2 %v1833_v60 }
 0xbeb   :  { %v1818_v40 = vmul.f32 %v1814_v59, %v2725_v34 }
 0xbed   :  { %v2823_v42 = vsub.f32 %v1800_v12, %v1818_v40 }
 0xbef   :  { %v1826_v43 = vmul.f32 %v2823_v42, %v2823_v42 }
 0xbf1   :  { %v1836_v44 = vsel %vm76_vm0, %v1826_v43, 0.0 }
 0xbf2   :  { %1837 = vadd.xlane.f32.xlu1 %v1836_v44 }
 0xc4d   :  { %v1829_v45 = vpop.xlane.xlu1 %1828 }
 0xc4e   :  { %v1839_v49 = vmul.f32 %v1829_v45, %v2725_v34 }
 0xc50   :  { %v1843_v41 = vadd.f32 1e-05, %v1839_v49 }
 0xc52   :  { %2150 = vrsqrt.f32 %v1843_v41  ;;  %vm1853_vm1 = vweird.f32 %v1843_v41 }
 0xc55   :  { %v1832_v50 = vpop.xlane.xlu0 %1831 }
 0xc56   :  { %v1840_v51 = vmul.f32 %v1832_v50, %v2725_v34 }
 0xc58   :  { %v2151_v32 = vpop.eup %2150  ;;  %v1844_v52 = vadd.f32 1e-05, %v1840_v51 }
 0xc59   :  { %v1848_v58 = vmul.f32 %v2151_v32, %v1843_v41  ;;  %vm1854_vm9 = vweird.f32 %v2151_v32 }
 0xc5a   :  { %2152 = vrsqrt.f32 %v1844_v52  ;;  %vm1855_vm10 = vmor %vm1853_vm1, %vm1854_vm9  ;;  %vm1863_vm12 = vweird.f32 %v1844_v52 }
 0xc5b   :  { %v1849_v56 = vmul.f32 %v2151_v32, %v1848_v58 }
 0xc5d   :  { %v1850_v62 = vmul.f32 0.5, %v1849_v56  ;;  %v1835_v48 = vpop.xlane.xlu2 %1834 }
 0xc5e   :  { %v1841_v55 = vmul.f32 %v1835_v48, %v2725_v34 }
 0xc5f   :  { %v1851_v6 = vsub.f32 1.5, %v1850_v62 }
 0xc60   :  { %v2153_v10 = vpop.eup %2152  ;;  %v1845_v16 = vadd.f32 1e-05, %v1841_v55 }
 0xc61   :  { %v1852_v61 = vmul.f32 %v2151_v32, %v1851_v6  ;;  %v1858_v39 = vmul.f32 %v2153_v10, %v1844_v52  ;;  %vm1864_vm11 = vweird.f32 %v2153_v10 }
 0xc62   :  { %2154 = vrsqrt.f32 %v1845_v16  ;;  %vm1865_vm13 = vmor %vm1863_vm12, %vm1864_vm11  ;;  %vm1873_vm15 = vweird.f32 %v1845_v16 }
 0xc63   :  { %v1856_v1 = vsel %vm1855_vm10, %v2151_v32, %v1852_v61  ;;  %v1859_v2 = vmul.f32 %v2153_v10, %v1858_v39 }
 0xc64   :  { %v1887_v20 = vmul.f32 %v1856_v1, %v1819_v27 }
 0xc65   :  { %v1860_v8 = vmul.f32 0.5, %v1859_v2  ;;  %v1838_v54 = vpop.xlane.xlu1 %1837 }
 0xc66   :  { %v1894_v0 = vmul.f32 %v2074_v57, %v1887_v20  ;;  %v1842_v5 = vmul.f32 %v1838_v54, %v2725_v34 }
 0xc67   :  { %v1861_v7 = vsub.f32 1.5, %v1860_v8 }
 0xc68   :  { %v2155_v9 = vpop.eup %2154  ;;  %v1901_v14 = vadd.f32 %v2075_v3, %v1894_v0  ;;  %v1846_v11 = vadd.f32 1e-05, %v1842_v5 }
 0xc69   :  { %v1862_v36 = vmul.f32 %v2153_v10, %v1861_v7  ;;  %v1868_v13 = vmul.f32 %v2155_v9, %v1845_v16  ;;  %vm1874_vm14 = vweird.f32 %v2155_v9 }
 0xc6a   :  { %1905 = vst.msk [vmem:[#allocation5] sm:$0xff] %vm76_vm0, %v1901_v14  ;;  %2156 = vrsqrt.f32 %v1846_v11  ;;  %vm1875_vm2 = vmor %vm1873_vm15, %vm1874_vm14  ;;  %vm1883_vm4 = vweird.f32 %v1846_v11 }
 0xc6b   :  { %v1866_v25 = vsel %vm1865_vm13, %v2153_v10, %v1862_v36  ;;  %v1869_v38 = vmul.f32 %v2155_v9, %v1868_v13 }
 0xc6c   :  { %v1888_v37 = vmul.f32 %v1866_v25, %v2811_v18 }
 0xc6d   :  { %v1870_v15 = vmul.f32 0.5, %v1869_v38 }
 0xc6e   :  { %v1895_v17 = vmul.f32 %v2074_v57, %v1888_v37 }
 0xc6f   :  { %v1871_v19 = vsub.f32 1.5, %v1870_v15 }
 0xc70   :  { %v2157_v34 = vpop.eup %2156  ;;  %v1902_v21 = vadd.f32 %v2075_v3, %v1895_v17 }
 0xc71   :  { %v1872_v23 = vmul.f32 %v2155_v9, %v1871_v19  ;;  %v1878_v4 = vmul.f32 %v2157_v34, %v1846_v11  ;;  %vm1884_vm3 = vweird.f32 %v2157_v34 }
 0xc72   :  { %1906 = vst.msk [vmem:[#allocation5 + $0x8] sm:$0xff] %vm76_vm0, %v1902_v21  ;;  %vm1885_vm5 = vmor %vm1883_vm4, %vm1884_vm3 }
 0xc73   :  { %v1876_v12 = vsel %vm1875_vm2, %v2155_v9, %v1872_v23  ;;  %v1879_v24 = vmul.f32 %v2157_v34, %v1878_v4 }
 0xc74   :  { %v1889_v63 = vmul.f32 %v1876_v12, %v2817_v35 }
 0xc75   :  { %v1880_v30 = vmul.f32 0.5, %v1879_v24 }
 0xc76   :  { %v1896_v27 = vmul.f32 %v2074_v57, %v1889_v63 }
 0xc77   :  { %v1881_v28 = vsub.f32 1.5, %v1880_v30 }
 0xc78   :  { %v1903_v26 = vadd.f32 %v2075_v3, %v1896_v27 }
 0xc79   :  { %v1882_v31 = vmul.f32 %v2157_v34, %v1881_v28 }
 0xc7a   :  { %1907 = vst.msk [vmem:[#allocation5 + $0x10] sm:$0xff] %vm76_vm0, %v1903_v26 }
 0xc7b   :  { %v1886_v47 = vsel %vm1885_vm5, %v2157_v34, %v1882_v31 }
 0xc7c   :  { %v1890_v18 = vmul.f32 %v1886_v47, %v2823_v42 }
 0xc7e   :  { %v1897_v33 = vmul.f32 %v2074_v57, %v1890_v18 }
 0xc80   :  { %v1904_v53 = vadd.f32 %v2075_v3, %v1897_v33 }
 0xc82   :  { %1908 = vst.msk [vmem:[#allocation5 + $0x18] sm:$0xff] %vm76_vm0, %v1904_v53 }
 0xc83   :  { %1929 = dma.vmem_to_hbm [thread:$0]  %s1922_s12, 512, %s1924_s28, [#allocation4], %s2237_s18, %s2237_s18, %s2238_s19  }
 0xc84   :  { %2232 = dma.done.wait [#allocation4], 512  }
 0xc85   :  { %2233 = vsyncadd [#allocation4], 4294966784 }
 0xc86   :  { %2234 = dma.done.wait [#allocation7], 512  }
 0xc87   :  { %2235 = vsyncadd [#allocation7], 4294966784 }
 0xc88   :  { %1951 = vsyncpa [#allocation3], 1 }
 0xc89   :  { %1952 = vsyncpa [#allocation4], 1 }
 0xc8a   :  { %1953 = vsyncpa [#allocation7], 1 }

</bundles_post_ra>
